<compile_context>
chip_gen: v6e
topology: v6e:2x2x1
jax: 0.10.0
libtpu: 0.0.40
codegen_flags: <defaults>
</compile_context>

<pallas_src>
import math
from functools import partial

import numpy as np
import jax
import jax.numpy as jnp
from jax.experimental import pallas as pl
from jax.experimental.pallas import tpu as pltpu


# ---------------------------------------------------------------------------
# Kernel
# ---------------------------------------------------------------------------

def _log_sigmoid(x):
    # stable log(sigmoid(x)) = min(x, 0) - log(1 + exp(-|x|))
    # (jnp.log(1 + .) kept instead of log1p for guaranteed Mosaic lowering;
    #  the difference is far below the 1e-4 tolerance here.)
    return jnp.minimum(x, 0.0) - jnp.log(1.0 + jnp.exp(-jnp.abs(x)))


def _make_dice_kernel(*, n_valid, block_rows, emb, n_users, n_items,
                      int_weight, pop_weight, dis_pen):
    """Builds the fused DICE loss kernel with all static scalars baked in."""
    inv_n = 1.0 / float(n_valid)
    E = int(emb)

    def kernel(packed_ref, users_hbm, items_hbm, out_ref,
               acc_ref, u_tab, i_tab):
        step = pl.program_id(0)

        @pl.when(step == 0)
        def _init():
            # Single-buffered residency: copy the [int | pop | presence]
            # tables HBM -> VMEM scratch exactly once; they persist across
            # all grid steps.
            pltpu.sync_copy(users_hbm, u_tab)
            pltpu.sync_copy(items_hbm, i_tab)
            acc_ref[...] = jnp.zeros_like(acc_ref)

        packed = packed_ref[...]                    # (bk, 4) int32, one DMA
        u_idx = packed[:, 0:1]
        ip_idx = packed[:, 1:2]
        in_idx = packed[:, 2:3]
        m = packed[:, 3:4].astype(jnp.float32)      # (bk, 1) mask

        def onehot(idx, n):
            iota = jax.lax.broadcasted_iota(jnp.int32, (block_rows, n), 1)
            return (idx == iota).astype(jnp.float32)

        # Exact one-hot row gather on the MXU from the concatenated tables:
        # 2 matmuls (user gather + item p-minus-n gather) instead of 4/6.
        # TODO(synk): swap for a real dynamic row gather for large N.
        hi = jax.lax.Precision.HIGHEST
        g_u = jnp.dot(onehot(u_idx, n_users), u_tab[...],
                      precision=hi, preferred_element_type=jnp.float32)
        doh_item = onehot(ip_idx, n_items) - onehot(in_idx, n_items)
        g_i = jnp.dot(doh_item, i_tab[...],
                      precision=hi, preferred_element_type=jnp.float32)

        # prod[:, :E]   = u_int * (item_p_int - item_n_int)
        # prod[:, E:2E] = u_pop * (item_p_pop - item_n_pop)
        prod = g_u * g_i                            # (bk, 2E+1)
        d_int = jnp.sum(prod[:, :E], axis=-1, keepdims=True)      # (bk, 1)
        d_pop = jnp.sum(prod[:, E:2 * E], axis=-1, keepdims=True)

        rows = step * block_rows + jax.lax.broadcasted_iota(
            jnp.int32, (block_rows, 1), 0)
        v = (rows < n_valid).astype(jnp.float32)    # padding validity

        # One lane-stacked log-sigmoid + one element-wise VMEM accumulate;
        # cross-lane reductions are deferred to the finalize step.
        scores = jnp.concatenate([d_int, -d_pop, d_pop, d_int + d_pop], axis=1)
        weights = jnp.concatenate([m, m, v - m, v], axis=1)
        acc_ref[...] += weights * _log_sigmoid(scores)            # (bk, 4)

        @pl.when(step == pl.num_programs(0) - 1)
        def _finalize():
            acc = acc_ref[...]
            s_int = jnp.sum(acc[:, 0:1])        # sum m * ls(p_int - n_int)
            s_pop_a = jnp.sum(acc[:, 1:2])      # sum m * ls(n_pop - p_pop)
            s_pop_b = jnp.sum(acc[:, 2:3])      # sum (~m) * ls(p_pop - n_pop)
            s_tot = jnp.sum(acc[:, 3:4])        # sum ls(p_tot - n_tot)

            # L1 discrepancy over unique users / items via presence column.
            ut = u_tab[...]                     # (NU, 2E+1)
            it_ = i_tab[...]                    # (NI, 2E+1)
            pu = ut[:, 2 * E:2 * E + 1]
            pi = it_[:, 2 * E:2 * E + 1]
            disc_u = jnp.sum(jnp.abs(ut[:, :E] - ut[:, E:2 * E]) * pu) / (
                jnp.sum(pu) * float(E))
            disc_i = jnp.sum(jnp.abs(it_[:, :E] - it_[:, E:2 * E]) * pi) / (
                jnp.sum(pi) * float(E))

            out_ref[0] = -inv_n * s_tot
            out_ref[1] = -float(int_weight) * inv_n * s_int
            out_ref[2] = -float(pop_weight) * inv_n * (s_pop_a + s_pop_b)
            out_ref[3] = -float(dis_pen) * (disc_i + disc_u)

    return kernel


# ---------------------------------------------------------------------------
# Wrapper
# ---------------------------------------------------------------------------

@partial(jax.jit, static_argnames=("int_weight", "pop_weight", "dis_pen",
                                   "block_rows"))
def dice_forward(params, user, item_p, item_n, mask,
                 *, int_weight, pop_weight, dis_pen, block_rows=1024):
    """Mirrors DICE.forward with dis_loss='L1'."""
    users_int, users_pop, items_int, items_pop = params
    num_users, emb = users_int.shape
    num_items = items_int.shape[0]
    B, S = user.shape
    BS = B * S

    # block size over the flattened batch axis (multiple of 8, <= block_rows)
    bk = max(8, ((min(int(block_rows), BS) + 7) // 8) * 8)
    n_blocks = (BS + bk - 1) // bk
    padded_rows = n_blocks * bk
    pad = padded_rows - BS

    # pack the four per-row streams into one lane-packed int32 array
    flat = lambda x: x.reshape(-1).astype(jnp.int32)
    packed = jnp.stack([flat(user), flat(item_p), flat(item_n), flat(mask)],
                       axis=1)                                     # (BS, 4)
    packed = jnp.pad(packed, ((0, pad), (0, 0)))                   # (padded, 4)

    # device-side "unique" as presence masks (no host sync, fixed shapes)
    present_u = jnp.zeros((num_users,), jnp.float32).at[user.reshape(-1)].set(1.0)
    present_i = jnp.zeros((num_items,), jnp.float32).at[
        jnp.concatenate([item_p.reshape(-1), item_n.reshape(-1)])].set(1.0)

    # concatenated [int | pop | presence] tables -> 2 gathers instead of 4/6
    users_all = jnp.concatenate([users_int, users_pop, present_u[:, None]],
                                axis=1)                            # (NU, 2E+1)
    items_all = jnp.concatenate([items_int, items_pop, present_i[:, None]],
                                axis=1)                            # (NI, 2E+1)
    width = 2 * emb + 1

    kernel = _make_dice_kernel(n_valid=BS, block_rows=bk, emb=emb,
                               n_users=num_users, n_items=num_items,
                               int_weight=int_weight, pop_weight=pop_weight,
                               dis_pen=dis_pen)

    # VMEM budget: single-buffered resident tables + one-hot / gather temps,
    # capped by the physical per-core VMEM of the device generation.
    table_bytes = (num_users + num_items) * width * 4
    work_bytes = 4 * (bk * (num_users + 2 * num_items)   # one-hot temporaries
                      + 4 * bk * width                    # gathers / products
                      + 2 * bk * 4                        # packed idx (2 bufs)
                      + bk * 4)                           # accumulator
    est = table_bytes + work_bytes + (2 << 20)
    try:
        phys_vmem = int(pltpu.get_tpu_info().vmem_capacity_bytes)
    except Exception:
        phys_vmem = 64 << 20   # v7x per-TensorCore VMEM (smallest across gens)
    vmem_limit = int(min(max(32 << 20, 2 * est), int(0.9 * phys_vmem)))

    out = pl.pallas_call(
        kernel,
        out_shape=jax.ShapeDtypeStruct((4,), jnp.float32),
        grid=(n_blocks,),
        in_specs=[
            pl.BlockSpec((bk, 4), lambda i: (i, 0)),      # packed idx + mask
            pl.BlockSpec(memory_space=pl.ANY),            # users table (HBM)
            pl.BlockSpec(memory_space=pl.ANY),            # items table (HBM)
        ],
        out_specs=pl.BlockSpec((4,), lambda i: (0,),
                               memory_space=pltpu.MemorySpace.SMEM),
        scratch_shapes=[
            pltpu.VMEM((bk, 4), jnp.float32),             # loss accumulator
            pltpu.VMEM((num_users, width), jnp.float32),  # resident user table
            pltpu.VMEM((num_items, width), jnp.float32),  # resident item table
        ],
        compiler_params=pltpu.CompilerParams(
            dimension_semantics=("arbitrary",),
            vmem_limit_bytes=vmem_limit),
    )(packed, users_all, items_all)

    return {
        'loss_total': out[0],
        'loss_int': out[1],
        'loss_pop': out[2],
        'discrepancy_loss': out[3],
    }


# ---------------------------------------------------------------------------
# Pure-JAX reference (mirrors the PyTorch module, dis_loss='L1')
# ---------------------------------------------------------------------------

def dice_forward_ref(params, user, item_p, item_n, mask,
                     *, int_weight, pop_weight, dis_pen):
    users_int, users_pop, items_int, items_pop = params
    u_int = users_int[user]
    u_pop = users_pop[user]
    ip_int = items_int[item_p]
    ip_pop = items_pop[item_p]
    in_int = items_int[item_n]
    in_pop = items_pop[item_n]

    p_int = jnp.sum(u_int * ip_int, -1)
    n_int = jnp.sum(u_int * in_int, -1)
    p_pop = jnp.sum(u_pop * ip_pop, -1)
    n_pop = jnp.sum(u_pop * in_pop, -1)

    m = mask.astype(jnp.float32)
    logsig = lambda x: jnp.log(jax.nn.sigmoid(x))

    loss_int = -jnp.mean(m * logsig(p_int - n_int))
    loss_pop = (-jnp.mean(m * logsig(n_pop - p_pop))
                - jnp.mean((1.0 - m) * logsig(p_pop - n_pop)))
    loss_total = -jnp.mean(logsig((p_int + p_pop) - (n_int + n_pop)))

    item_all = np.unique(np.concatenate(
        [np.asarray(item_p).ravel(), np.asarray(item_n).ravel()]))
    user_all = np.unique(np.asarray(user).ravel())
    disc = (jnp.mean(jnp.abs(items_int[item_all] - items_pop[item_all]))
            + jnp.mean(jnp.abs(users_int[user_all] - users_pop[user_all])))

    return {
        'loss_total': loss_total,
        'loss_int': int_weight * loss_int,
        'loss_pop': pop_weight * loss_pop,
        'discrepancy_loss': -dis_pen * disc,
    }


# ---------------------------------------------------------------------------
# Main
# ---------------------------------------------------------------------------

if __name__ == "__main__":
    num_users, num_items, emb = 50, 80, 32
    B, S = 2, 8
    int_weight, pop_weight, dis_pen = 0.1, 0.1, 0.01

    key = jax.random.PRNGKey(0)
    k1, k2, k3, k4, k5, k6, k7, k8 = jax.random.split(key, 8)

    # deterministic init, mirrors init_params(): uniform(-stdv, stdv)
    stdv = 1.0 / math.sqrt(emb)
    users_int = jax.random.uniform(k1, (num_users, emb), jnp.float32, -stdv, stdv)
    users_pop = jax.random.uniform(k2, (num_users, emb), jnp.float32, -stdv, stdv)
    items_int = jax.random.uniform(k3, (num_items, emb), jnp.float32, -stdv, stdv)
    items_pop = jax.random.uniform(k4, (num_items, emb), jnp.float32, -stdv, stdv)
    params = (users_int, users_pop, items_int, items_pop)

    user = jax.random.randint(k5, (B, S), 0, num_users, jnp.int32)
    item_p = jax.random.randint(k6, (B, S), 0, num_items, jnp.int32)
    item_n = jax.random.randint(k7, (B, S), 0, num_items, jnp.int32)
    mask = jax.random.bernoulli(k8, 0.5, (B, S))

    out = dice_forward(params, user, item_p, item_n, mask,
                       int_weight=int_weight, pop_weight=pop_weight,
                       dis_pen=dis_pen)
    out = jax.tree_util.tree_map(jax.block_until_ready, out)

    ref = dice_forward_ref(params, user, item_p, item_n, mask,
                           int_weight=int_weight, pop_weight=pop_weight,
                           dis_pen=dis_pen)

    for k in ('loss_total', 'loss_int', 'loss_pop', 'discrepancy_loss'):
        np.testing.assert_allclose(np.asarray(out[k]), np.asarray(ref[k]),
                                   rtol=1e-4, atol=1e-6)

    print("KERNEL_OK")
</pallas_src>

<mosaic_0001>
module attributes {stable_mosaic.version = 11 : i64} {
  func.func @kernel(%arg0: i32, %arg1: memref<16x4xi32, #tpu.memory_space<vmem>>, %arg2: memref<50x65xf32, #tpu.memory_space<any>>, %arg3: memref<80x65xf32, #tpu.memory_space<any>>, %arg4: memref<4xf32, #tpu.memory_space<smem>>, %arg5: memref<16x4xf32, #tpu.memory_space<vmem>>, %arg6: memref<50x65xf32, #tpu.memory_space<vmem>>, %arg7: memref<80x65xf32, #tpu.memory_space<vmem>>) attributes {dimension_semantics = [#tpu.dimension_semantics<arbitrary>], iteration_bounds = array<i64: 1>, scalar_prefetch = 0 : i64, scratch_operands = 3 : i64, tpu.core_type = #tpu.core_type<tc>, window_params = [{transform_indices = @transform_0, window_bounds = array<i64: 16, 4>}, {}, {}, {transform_indices = @transform_3, window_bounds = array<i64: 4>}]} {
    %c0_i32 = arith.constant 0 : i32
    %0 = arith.cmpi eq, %arg0, %c0_i32 : i32
    %1 = arith.extui %0 : i1 to i32
    %c0_i32_0 = arith.constant 0 : i32
    %2 = arith.cmpi ne, %1, %c0_i32_0 : i32
    scf.if %2 {
      "tpu.region"() ({
        %69 = tpu.sem_alloc : memref<!tpu.dma_semaphore, #tpu.memory_space<semaphore_mem>>
        tpu.enqueue_dma source(%arg2 : memref<50x65xf32, #tpu.memory_space<any>>) target(%arg6 : memref<50x65xf32, #tpu.memory_space<vmem>>) target_semaphore(%69 : memref<!tpu.dma_semaphore, #tpu.memory_space<semaphore_mem>>)
        tpu.wait_dma2 semaphore(%69 : memref<!tpu.dma_semaphore, #tpu.memory_space<semaphore_mem>>) src(%arg2 : memref<50x65xf32, #tpu.memory_space<any>>) dst(%arg6 : memref<50x65xf32, #tpu.memory_space<vmem>>)
        tpu.yield
      }) : () -> ()
      "tpu.region"() ({
        %69 = tpu.sem_alloc : memref<!tpu.dma_semaphore, #tpu.memory_space<semaphore_mem>>
        tpu.enqueue_dma source(%arg3 : memref<80x65xf32, #tpu.memory_space<any>>) target(%arg7 : memref<80x65xf32, #tpu.memory_space<vmem>>) target_semaphore(%69 : memref<!tpu.dma_semaphore, #tpu.memory_space<semaphore_mem>>)
        tpu.wait_dma2 semaphore(%69 : memref<!tpu.dma_semaphore, #tpu.memory_space<semaphore_mem>>) src(%arg3 : memref<80x65xf32, #tpu.memory_space<any>>) dst(%arg7 : memref<80x65xf32, #tpu.memory_space<vmem>>)
        tpu.yield
      }) : () -> ()
      %cst_20 = arith.constant 0.000000e+00 : f32
      %67 = vector.broadcast %cst_20 : f32 to vector<16x4xf32>
      %c0_21 = arith.constant 0 : index
      %c0_22 = arith.constant 0 : index
      %68 = vector.load %arg5[%c0_21, %c0_22] : memref<16x4xf32, #tpu.memory_space<vmem>>, vector<16x4xf32>
      tpu.vector_store %arg5[%c0_21, %c0_22], %67 {strides = array<i32>} : memref<16x4xf32, #tpu.memory_space<vmem>>, vector<16x4xf32>,
    } else {
    }
    %c0 = arith.constant 0 : index
    %c0_1 = arith.constant 0 : index
    %3 = vector.load %arg1[%c0, %c0_1] : memref<16x4xi32, #tpu.memory_space<vmem>>, vector<16x4xi32>
    %4 = vector.extract_strided_slice %3 {offsets = [0, 0], sizes = [16, 1], strides = [1, 1]} : vector<16x4xi32> to vector<16x1xi32>
    %5 = vector.extract_strided_slice %3 {offsets = [0, 1], sizes = [16, 1], strides = [1, 1]} : vector<16x4xi32> to vector<16x1xi32>
    %6 = vector.extract_strided_slice %3 {offsets = [0, 2], sizes = [16, 1], strides = [1, 1]} : vector<16x4xi32> to vector<16x1xi32>
    %7 = vector.extract_strided_slice %3 {offsets = [0, 3], sizes = [16, 1], strides = [1, 1]} : vector<16x4xi32> to vector<16x1xi32>
    %8 = arith.sitofp %7 : vector<16x1xi32> to vector<16x1xf32>
    %9 = tpu.iota {dimensions = array<i32: 1>} : vector<16x50xi32>
    %10 = vector.broadcast %4 : vector<16x1xi32> to vector<16x50xi32>
    %11 = arith.cmpi eq, %10, %9 : vector<16x50xi32>
    %12 = arith.extui %11 : vector<16x50xi1> to vector<16x50xi32>
    %13 = arith.sitofp %12 : vector<16x50xi32> to vector<16x50xf32>
    %c0_2 = arith.constant 0 : index
    %c0_3 = arith.constant 0 : index
    %14 = vector.load %arg6[%c0_2, %c0_3] : memref<50x65xf32, #tpu.memory_space<vmem>>, vector<50x65xf32>
    %cst = arith.constant dense<0.000000e+00> : vector<16x65xf32>
    %15 = tpu.matmul %13, %14, %cst {dimension_numbers = #tpu.dot_dimension_numbers<[1], [0], [0], [1], [0, 0, 1, 1], [], []>, precision = #tpu.contract_precision<fp32>} : vector<16x50xf32>, vector<50x65xf32>, vector<16x65xf32> -> vector<16x65xf32>
    %16 = tpu.iota {dimensions = array<i32: 1>} : vector<16x80xi32>
    %17 = vector.broadcast %5 : vector<16x1xi32> to vector<16x80xi32>
    %18 = arith.cmpi eq, %17, %16 : vector<16x80xi32>
    %19 = arith.extui %18 : vector<16x80xi1> to vector<16x80xi32>
    %20 = arith.sitofp %19 : vector<16x80xi32> to vector<16x80xf32>
    %21 = tpu.iota {dimensions = array<i32: 1>} : vector<16x80xi32>
    %22 = vector.broadcast %6 : vector<16x1xi32> to vector<16x80xi32>
    %23 = arith.cmpi eq, %22, %21 : vector<16x80xi32>
    %24 = arith.extui %23 : vector<16x80xi1> to vector<16x80xi32>
    %25 = arith.sitofp %24 : vector<16x80xi32> to vector<16x80xf32>
    %26 = arith.subf %20, %25 : vector<16x80xf32>
    %c0_4 = arith.constant 0 : index
    %c0_5 = arith.constant 0 : index
    %27 = vector.load %arg7[%c0_4, %c0_5] : memref<80x65xf32, #tpu.memory_space<vmem>>, vector<80x65xf32>
    %cst_6 = arith.constant dense<0.000000e+00> : vector<16x65xf32>
    %28 = tpu.matmul %26, %27, %cst_6 {dimension_numbers = #tpu.dot_dimension_numbers<[1], [0], [0], [1], [0, 0, 1, 1], [], []>, precision = #tpu.contract_precision<fp32>} : vector<16x80xf32>, vector<80x65xf32>, vector<16x65xf32> -> vector<16x65xf32>
    %29 = arith.mulf %15, %28 : vector<16x65xf32>
    %30 = vector.extract_strided_slice %29 {offsets = [0, 0], sizes = [16, 32], strides = [1, 1]} : vector<16x65xf32> to vector<16x32xf32>
    %cst_7 = arith.constant dense<0.000000e+00> : vector<16xf32>
    %31 = vector.multi_reduction <add>, %30, %cst_7 [1] : vector<16x32xf32> to vector<16xf32>
    %32 = vector.shape_cast %31 : vector<16xf32> to vector<16x1xf32>
    %33 = vector.extract_strided_slice %29 {offsets = [0, 32], sizes = [16, 32], strides = [1, 1]} : vector<16x65xf32> to vector<16x32xf32>
    %cst_8 = arith.constant dense<0.000000e+00> : vector<16xf32>
    %34 = vector.multi_reduction <add>, %33, %cst_8 [1] : vector<16x32xf32> to vector<16xf32>
    %35 = vector.shape_cast %34 : vector<16xf32> to vector<16x1xf32>
    %c16_i32 = arith.constant 16 : i32
    %36 = arith.muli %arg0, %c16_i32 : i32
    %37 = tpu.iota {dimensions = array<i32: 0>} : vector<16x1xi32>
    %38 = vector.broadcast %36 : i32 to vector<16x1xi32>
    %39 = arith.addi %38, %37 : vector<16x1xi32>
    %c16_i32_9 = arith.constant 16 : i32
    %40 = vector.broadcast %c16_i32_9 : i32 to vector<16x1xi32>
    %41 = arith.cmpi slt, %39, %40 : vector<16x1xi32>
    %42 = arith.extui %41 : vector<16x1xi1> to vector<16x1xi32>
    %43 = arith.sitofp %42 : vector<16x1xi32> to vector<16x1xf32>
    %cst_10 = arith.constant 0.000000e+00 : f32
    %44 = vector.broadcast %cst_10 : f32 to vector<16x1xf32>
    %45 = arith.subf %44, %35 : vector<16x1xf32>
    %46 = arith.addf %32, %35 : vector<16x1xf32>
    %47 = tpu.concatenate %32, %45, %35, %46 in 1 : vector<16x1xf32>, vector<16x1xf32>, vector<16x1xf32>, vector<16x1xf32> -> vector<16x4xf32>
    %48 = arith.subf %43, %8 : vector<16x1xf32>
    %49 = tpu.concatenate %8, %8, %48, %43 in 1 : vector<16x1xf32>, vector<16x1xf32>, vector<16x1xf32>, vector<16x1xf32> -> vector<16x4xf32>
    %c0_11 = arith.constant 0 : index
    %c0_12 = arith.constant 0 : index
    %50 = vector.load %arg5[%c0_11, %c0_12] : memref<16x4xf32, #tpu.memory_space<vmem>>, vector<16x4xf32>
    %cst_13 = arith.constant 0.000000e+00 : f32
    %51 = vector.broadcast %cst_13 : f32 to vector<16x4xf32>
    %52 = arith.minimumf %47, %51 : vector<16x4xf32>
    %53 = math.absf %47 : vector<16x4xf32>
    %cst_14 = arith.constant 0.000000e+00 : f32
    %54 = vector.broadcast %cst_14 : f32 to vector<16x4xf32>
    %55 = arith.subf %54, %53 : vector<16x4xf32>
    %56 = math.exp %55 : vector<16x4xf32>
    %cst_15 = arith.constant 1.000000e+00 : f32
    %57 = vector.broadcast %cst_15 : f32 to vector<16x4xf32>
    %58 = arith.addf %57, %56 : vector<16x4xf32>
    %59 = math.log %58 : vector<16x4xf32>
    %60 = arith.subf %52, %59 : vector<16x4xf32>
    %61 = arith.mulf %49, %60 : vector<16x4xf32>
    %62 = arith.addf %50, %61 : vector<16x4xf32>
    %c0_16 = arith.constant 0 : index
    %c0_17 = arith.constant 0 : index
    %63 = vector.load %arg5[%c0_16, %c0_17] : memref<16x4xf32, #tpu.memory_space<vmem>>, vector<16x4xf32>
    tpu.vector_store %arg5[%c0_16, %c0_17], %62 {strides = array<i32>} : memref<16x4xf32, #tpu.memory_space<vmem>>, vector<16x4xf32>,
    %c0_i32_18 = arith.constant 0 : i32
    %64 = arith.cmpi eq, %arg0, %c0_i32_18 : i32
    %65 = arith.extui %64 : i1 to i32
    %c0_i32_19 = arith.constant 0 : i32
    %66 = arith.cmpi ne, %65, %c0_i32_19 : i32
    scf.if %66 {
      %c0_20 = arith.constant 0 : index
      %c0_21 = arith.constant 0 : index
      %67 = vector.load %arg5[%c0_20, %c0_21] : memref<16x4xf32, #tpu.memory_space<vmem>>, vector<16x4xf32>
      %68 = vector.extract_strided_slice %67 {offsets = [0, 0], sizes = [16, 1], strides = [1, 1]} : vector<16x4xf32> to vector<16x1xf32>
      %69 = vector.shape_cast %68 : vector<16x1xf32> to vector<1x16x1xf32>
      %cst_22 = arith.constant dense<0.000000e+00> : vector<1xf32>
      %70 = vector.multi_reduction <add>, %69, %cst_22 [1, 2] : vector<1x16x1xf32> to vector<1xf32>
      %71 = vector.shape_cast %70 : vector<1xf32> to vector<1x1x1xf32>
      %72 = vector.extract %71[0, 0, 0] : f32 from vector<1x1x1xf32>
      %73 = vector.extract_strided_slice %67 {offsets = [0, 1], sizes = [16, 1], strides = [1, 1]} : vector<16x4xf32> to vector<16x1xf32>
      %74 = vector.shape_cast %73 : vector<16x1xf32> to vector<1x16x1xf32>
      %cst_23 = arith.constant dense<0.000000e+00> : vector<1xf32>
      %75 = vector.multi_reduction <add>, %74, %cst_23 [1, 2] : vector<1x16x1xf32> to vector<1xf32>
      %76 = vector.shape_cast %75 : vector<1xf32> to vector<1x1x1xf32>
      %77 = vector.extract %76[0, 0, 0] : f32 from vector<1x1x1xf32>
      %78 = vector.extract_strided_slice %67 {offsets = [0, 2], sizes = [16, 1], strides = [1, 1]} : vector<16x4xf32> to vector<16x1xf32>
      %79 = vector.shape_cast %78 : vector<16x1xf32> to vector<1x16x1xf32>
      %cst_24 = arith.constant dense<0.000000e+00> : vector<1xf32>
      %80 = vector.multi_reduction <add>, %79, %cst_24 [1, 2] : vector<1x16x1xf32> to vector<1xf32>
      %81 = vector.shape_cast %80 : vector<1xf32> to vector<1x1x1xf32>
      %82 = vector.extract %81[0, 0, 0] : f32 from vector<1x1x1xf32>
      %83 = vector.extract_strided_slice %67 {offsets = [0, 3], sizes = [16, 1], strides = [1, 1]} : vector<16x4xf32> to vector<16x1xf32>
      %84 = vector.shape_cast %83 : vector<16x1xf32> to vector<1x16x1xf32>
      %cst_25 = arith.constant dense<0.000000e+00> : vector<1xf32>
      %85 = vector.multi_reduction <add>, %84, %cst_25 [1, 2] : vector<1x16x1xf32> to vector<1xf32>
      %86 = vector.shape_cast %85 : vector<1xf32> to vector<1x1x1xf32>
      %87 = vector.extract %86[0, 0, 0] : f32 from vector<1x1x1xf32>
      %c0_26 = arith.constant 0 : index
      %c0_27 = arith.constant 0 : index
      %88 = vector.load %arg6[%c0_26, %c0_27] : memref<50x65xf32, #tpu.memory_space<vmem>>, vector<50x65xf32>
      %c0_28 = arith.constant 0 : index
      %c0_29 = arith.constant 0 : index
      %89 = vector.load %arg7[%c0_28, %c0_29] : memref<80x65xf32, #tpu.memory_space<vmem>>, vector<80x65xf32>
      %90 = vector.extract_strided_slice %88 {offsets = [0, 64], sizes = [50, 1], strides = [1, 1]} : vector<50x65xf32> to vector<50x1xf32>
      %91 = vector.extract_strided_slice %89 {offsets = [0, 64], sizes = [80, 1], strides = [1, 1]} : vector<80x65xf32> to vector<80x1xf32>
      %92 = vector.extract_strided_slice %88 {offsets = [0, 0], sizes = [50, 32], strides = [1, 1]} : vector<50x65xf32> to vector<50x32xf32>
      %93 = vector.extract_strided_slice %88 {offsets = [0, 32], sizes = [50, 32], strides = [1, 1]} : vector<50x65xf32> to vector<50x32xf32>
      %94 = arith.subf %92, %93 : vector<50x32xf32>
      %95 = math.absf %94 : vector<50x32xf32>
      %96 = vector.broadcast %90 : vector<50x1xf32> to vector<50x32xf32>
      %97 = arith.mulf %95, %96 : vector<50x32xf32>
      %98 = vector.shape_cast %97 : vector<50x32xf32> to vector<1x50x32xf32>
      %cst_30 = arith.constant dense<0.000000e+00> : vector<1xf32>
      %99 = vector.multi_reduction <add>, %98, %cst_30 [1, 2] : vector<1x50x32xf32> to vector<1xf32>
      %100 = vector.shape_cast %99 : vector<1xf32> to vector<1x1x1xf32>
      %101 = vector.extract %100[0, 0, 0] : f32 from vector<1x1x1xf32>
      %102 = vector.shape_cast %90 : vector<50x1xf32> to vector<1x50x1xf32>
      %cst_31 = arith.constant dense<0.000000e+00> : vector<1xf32>
      %103 = vector.multi_reduction <add>, %102, %cst_31 [1, 2] : vector<1x50x1xf32> to vector<1xf32>
      %104 = vector.shape_cast %103 : vector<1xf32> to vector<1x1x1xf32>
      %105 = vector.extract %104[0, 0, 0] : f32 from vector<1x1x1xf32>
      %cst_32 = arith.constant 3.200000e+01 : f32
      %106 = arith.mulf %105, %cst_32 : f32
      %107 = arith.divf %101, %106 : f32
      %108 = vector.extract_strided_slice %89 {offsets = [0, 0], sizes = [80, 32], strides = [1, 1]} : vector<80x65xf32> to vector<80x32xf32>
      %109 = vector.extract_strided_slice %89 {offsets = [0, 32], sizes = [80, 32], strides = [1, 1]} : vector<80x65xf32> to vector<80x32xf32>
      %110 = arith.subf %108, %109 : vector<80x32xf32>
      %111 = math.absf %110 : vector<80x32xf32>
      %112 = vector.broadcast %91 : vector<80x1xf32> to vector<80x32xf32>
      %113 = arith.mulf %111, %112 : vector<80x32xf32>
      %114 = vector.shape_cast %113 : vector<80x32xf32> to vector<1x80x32xf32>
      %cst_33 = arith.constant dense<0.000000e+00> : vector<1xf32>
      %115 = vector.multi_reduction <add>, %114, %cst_33 [1, 2] : vector<1x80x32xf32> to vector<1xf32>
      %116 = vector.shape_cast %115 : vector<1xf32> to vector<1x1x1xf32>
      %117 = vector.extract %116[0, 0, 0] : f32 from vector<1x1x1xf32>
      %118 = vector.shape_cast %91 : vector<80x1xf32> to vector<1x80x1xf32>
      %cst_34 = arith.constant dense<0.000000e+00> : vector<1xf32>
      %119 = vector.multi_reduction <add>, %118, %cst_34 [1, 2] : vector<1x80x1xf32> to vector<1xf32>
      %120 = vector.shape_cast %119 : vector<1xf32> to vector<1x1x1xf32>
      %121 = vector.extract %120[0, 0, 0] : f32 from vector<1x1x1xf32>
      %cst_35 = arith.constant 3.200000e+01 : f32
      %122 = arith.mulf %121, %cst_35 : f32
      %123 = arith.divf %117, %122 : f32
      %cst_36 = arith.constant -6.250000e-02 : f32
      %124 = arith.mulf %cst_36, %87 : f32
      %c0_37 = arith.constant 0 : index
      %125 = memref.load %arg4[%c0_37] : memref<4xf32, #tpu.memory_space<smem>>
      memref.store %124, %arg4[%c0_37] : memref<4xf32, #tpu.memory_space<smem>>
      %cst_38 = arith.constant -6.250000e-03 : f32
      %126 = arith.mulf %cst_38, %72 : f32
      %c1 = arith.constant 1 : index
      %127 = memref.load %arg4[%c1] : memref<4xf32, #tpu.memory_space<smem>>
      memref.store %126, %arg4[%c1] : memref<4xf32, #tpu.memory_space<smem>>
      %128 = arith.addf %77, %82 : f32
      %cst_39 = arith.constant -6.250000e-03 : f32
      %129 = arith.mulf %cst_39, %128 : f32
      %c2 = arith.constant 2 : index
      %130 = memref.load %arg4[%c2] : memref<4xf32, #tpu.memory_space<smem>>
      memref.store %129, %arg4[%c2] : memref<4xf32, #tpu.memory_space<smem>>
      %131 = arith.addf %123, %107 : f32
      %cst_40 = arith.constant -0.00999999977 : f32
      %132 = arith.mulf %cst_40, %131 : f32
      %c3 = arith.constant 3 : index
      %133 = memref.load %arg4[%c3] : memref<4xf32, #tpu.memory_space<smem>>
      memref.store %132, %arg4[%c3] : memref<4xf32, #tpu.memory_space<smem>>
    } else {
    }
    return
  }
  func.func @transform_0(%arg0: i32) -> (i32, i32) {
    %c0_i32 = arith.constant 0 : i32
    %c0_i32_0 = arith.constant 0 : i32
    return %arg0, %c0_i32 : i32, i32
  }
  func.func @transform_3(%arg0: i32) -> i32 {
    %c0_i32 = arith.constant 0 : i32
    %c0_i32_0 = arith.constant 0 : i32
    return %c0_i32 : i32
  }
}

</mosaic_0001>

<bundles_post_ra>
// kernel: dice_forward.1
= control target key start
LH: loop header
LB: loop body
LE: loop exit
PB: predicated region body
PF: predicated region fallthrough
CT: control target
= control target key end

     0   :  { %8 = vsyncpa [#allocation6], 0  ;;  %s3227_s0 = inlined_call_operand.vmem [shape: s32[16,4], index: 0, kind: input, shape index: {}]   ;;  %s3228_s1 = inlined_call_operand.vmem [shape: f32[50,65], index: 1, kind: input, shape index: {}]   ;;  %s3229_s2 = inlined_call_operand.vmem [shape: f32[80,65], index: 2, kind: input, shape index: {}]   ;;  %s3230_s3 = inlined_call_operand.vmem [shape: f32[4], index: 3, kind: output, shape index: {}]  }
   0x1   :  { %v53_v0 = vld [vmem:[%s3228_s1] sm:$0xff]  ;;  %v55_v1 = vld [vmem:[%s3228_s1 + $0x8] sm:$0xff]  ;;  %v57_v2 = vld [vmem:[%s3228_s1 + $0x10] sm:$0xff] }
   0x2   :  { %54 = vst [vmem:[#allocation3 + $0x30] sm:$0xff] %v53_v0  ;;  %56 = vst [vmem:[#allocation3] sm:$0xff] %v55_v1  ;;  %v59_v3 = vld [vmem:[%s3228_s1 + $0x18] sm:$0xff]  ;;  %v61_v4 = vld [vmem:[%s3228_s1 + $0x20] sm:$0xff] }
   0x3   :  { %58 = vst [vmem:[#allocation3 + $0x18] sm:$0xff] %v57_v2  ;;  %v63_v5 = vld [vmem:[%s3228_s1 + $0x28] sm:$0xff]  ;;  %60 = vst [vmem:[#allocation3 + $0x10] sm:$0xff] %v59_v3  ;;  %v2000_v6 = vld [vmem:[%s3228_s1 + $0x30] sm:$0x3] }
   0x4   :  { %62 = vst [vmem:[#allocation3 + $0x8] sm:$0xff] %v61_v4  ;;  %64 = vst [vmem:[#allocation3 + $0x20] sm:$0xff] %v63_v5 }
   0x5   :  { %76 = vst [vmem:[#allocation3 + $0x28] sm:$0x3] %v2000_v6 }
   0x6   :  { %80 = vsyncadd [#allocation7], 800 }
   0x7   :  { %2443 = dma.done.wait [#allocation7], 800 }
   0x8   :  { %2444 = vsyncadd [#allocation7], 4294966496 }
   0x9   :  { %v2504_v7 = vld [vmem:[%s3229_s2] sm:$0xff]  ;;  %v2509_v8 = vld [vmem:[%s3229_s2 + $0x8] sm:$0xff]  ;;  %v2514_v9 = vld [vmem:[%s3229_s2 + $0x10] sm:$0xff] }
   0xa   :  { %v2519_v10 = vld [vmem:[%s3229_s2 + $0x18] sm:$0xff]  ;;  %v2524_v11 = vld [vmem:[%s3229_s2 + $0x20] sm:$0xff]  ;;  %v2529_v12 = vld [vmem:[%s3229_s2 + $0x28] sm:$0xff] }
   0xb   :  { %v2534_v13 = vld [vmem:[%s3229_s2 + $0x30] sm:$0xff]  ;;  %v2539_v14 = vld [vmem:[%s3229_s2 + $0x38] sm:$0xff]  ;;  %v2544_v15 = vld [vmem:[%s3229_s2 + $0x40] sm:$0xff] }
   0xc   :  { %v2549_v16 = vld [vmem:[%s3229_s2 + $0x48] sm:$0xff] }
   0xd   :  { %144 = vsyncadd [#allocation9], 1280 }
   0xe   :  { %2445 = dma.done.wait [#allocation9], 1280 }
   0xf   :  { %2446 = vsyncadd [#allocation9], 4294966016  ;;  %v2554_v17 = vld [vmem:[%s3227_s0] sm:$0xff]  ;;  %vm183_vm0 = vcmask 1041408   ;;  %v2449_v18 = vmov 0   ;;  %v2450_v19 = vmov 1   ;;  %v155_v1 = vlaneseq }
  0x10   :  { %2410 = vset.pattern.permute.xlu0 %v2449_v18  ;;  %2411 = vset.pattern.permute.xlu1 %v2450_v19  ;;  %v175_v20 = vld [vmem:[#allocation3 + $0x28] sm:$0x3]  ;;  %v2556_v21 = vld [vmem:[#allocation3 + $0x20] sm:$0xff]  ;;  %v2568_v26 = vld [vmem:[#allocation3 + $0x10] sm:$0xff]  ;;  %v2451_v41 = vmov 2   ;;  %vm176_vm1 = vcmask 408576  }
  0x11   :  { %v2558_v22 = vld [vmem:[#allocation3 + $0x8] sm:$0xff]  ;;  %158 = vperm.xlu0 %2410, %v2554_v17   ;;  %755 = vperm.xlu1 %2411, %v2554_v17   ;;  %v185_v23 = vsel %vm183_vm0, %v175_v20, 0  ;;  %v2563_v24 = vand.u32 4294901760, %v2556_v21  ;;  %v2570_v27 = vld [vmem:[#allocation3 + $0x18] sm:$0xff]  ;;  %v2572_v28 = vld [vmem:[#allocation3] sm:$0xff]  ;;  %v2582_v31 = vand.u32 4294901760, %v2568_v26 }
  0x12   :  { %v2566_v25 = vand.u32 4294901760, %v2558_v22  ;;  %v2577_v29 = vld [vmem:[%s3227_s0 + $0x8] sm:$0xff]  ;;  %v2579_v30 = vand.u32 4294901760, %v185_v23  ;;  %v2585_v32 = vand.u32 4294901760, %v2570_v27  ;;  %v2587_v33 = vld [vmem:[#allocation3 + $0x30] sm:$0xff]  ;;  %v2598_v36 = vand.u32 4294901760, %v2572_v28 }
  0x13   :  { %v2591_v34 = vsub.f32 %v2556_v21, %v2563_v24  ;;  %v2605_v38 = vsub.f32 %v2568_v26, %v2582_v31  ;;  %v2613_v40 = vand.u32 4294901760, %v2587_v33  ;;  %v2677_v2 = vand.u32 127, %v155_v1  ;;  %s2453_s0 = smov 125   ;;  %s2455_s21 = smov 96  }
  0x14   :  { %v2595_v35 = vsub.f32 %v2558_v22, %v2566_v25  ;;  %v2601_v37 = vsub.f32 %v185_v23, %v2579_v30  ;;  %v2609_v39 = vsub.f32 %v2570_v27, %v2585_v32  ;;  %2139 = vmatprep.subr.mxu0 %v2579_v30  ;;  %v2632_v46 = vsub.f32 %v2572_v28, %v2598_v36  ;;  %s2456_s22 = smov 126   ;;  %s2457_s23 = smov 127  }
  0x15   :  { %161 = vperm.xlu0 %2410, %v2577_v29   ;;  %2412 = vset.pattern.permute.xlu1 %v2451_v41  ;;  %v2617_v42 = vand.u32 4294901760, %v2591_v34  ;;  %v2627_v45 = vand.u32 4294901760, %v2605_v38  ;;  %v2647_v51 = vsub.f32 %v2587_v33, %v2613_v40  ;;  %v2452_v4 = vmov 0.0   ;;  %s2458_s24 = smov 64   ;;  %s1969_s17 = sshll.u32 %s3230_s3, 4  ;;  %s1970_s17 = int_to_ptr.vmem [resolvable:$true] %s1969_s17 }
  0x16   :  { %v2620_v43 = vand.u32 4294901760, %v2595_v35  ;;  %767 = vperm.xlu1 %2412, %v2554_v17   ;;  %v2624_v44 = vand.u32 4294901760, %v2601_v37  ;;  %2140 = vmatpush3.msra.mxu0 %v2579_v30  ;;  %v2642_v50 = vand.u32 4294901760, %v2609_v39  ;;  %v2655_v55 = vand.u32 4294901760, %v2632_v46  ;;  %s2431_s2 = scalar_lea.vmem %s1970_s17, 16  ;;  %p2436_p1 = scmp.lt.s32.totalorder %s1970_s17, %s1970_s17 }
  0x17   :  { %v308_v47 = vsub.f32 %v2591_v34, %v2617_v42  ;;  %2141 = vmatprep.subr.mxu0 %v2563_v24  ;;  %v322_v54 = vsub.f32 %v2605_v38, %v2627_v45  ;;  %v2661_v58 = vand.u32 4294901760, %v2647_v51  ;;  %vm790_vm6 = vcmask 654336   ;;  %p2432_p0 = scmp.ne.s32.totalorder %s1970_s17, %s2431_s2  ;;  %p2437_p2 = scmp.lt.s32.totalorder %s2431_s2, %s2431_s2 }
  0x18   :  { %v301_v48 = vsub.f32 %v2601_v37, %v2624_v44  ;;  %v315_v49 = vsub.f32 %v2595_v35, %v2620_v43  ;;  %2142 = vmatpush3.msra.mxu0 %v2563_v24  ;;  %v329_v57 = vsub.f32 %v2609_v39, %v2642_v50  ;;  %v336_v60 = vsub.f32 %v2632_v46, %v2655_v55 }
  0x19   :  { %2413 = vset.pattern.permute.xlu0 %v2450_v19  ;;  %2143 = vmatprep.subr.mxu0 %v2566_v25  ;;  %v309_v53 = vand.u32 4294901760, %v308_v47  ;;  %v323_v59 = vand.u32 4294901760, %v322_v54  ;;  %v343_v62 = vsub.f32 %v2647_v51, %v2661_v58  ;;  %vm1405_vm9 = vcmask 261120   ;;  %p2438_p3 = por %p2437_p2, %p2436_p1 }
  0x1a   :  { %770 = vperm.xlu1 %2412, %v2577_v29   ;;  %758 = vperm.xlu0 %2413, %v2577_v29   ;;  %v302_v52 = vand.u32 4294901760, %v301_v48  ;;  %v316_v56 = vand.u32 4294901760, %v315_v49  ;;  %v330_v61 = vand.u32 4294901760, %v329_v57  ;;  %v337_v63 = vand.u32 4294901760, %v336_v60 }
  0x1b   :  { %2144 = vmatpush3.msra.mxu0 %v2566_v25  ;;  %v344_v0 = vand.u32 4294901760, %v343_v62  ;;  %v2712_v57 = vand.u32 4294901760, %v2549_v16  ;;  %v2719_v60 = vand.u32 4294901760, %v2544_v15  ;;  %vm1443_vm10 = vcmask 7168   ;;  %p2439_p4 = pnand %p2438_p3, %p2432_p0 }
  0x1c   :  { %2156 = vmatprep.subr.mxu1 %v302_v52  ;;  %2145 = vmatprep.subr.mxu0 %v2582_v31  ;;  %vm1446_vm11 = vcmask 15360   ;;  %vm148_vm12 = vcmask 31744   ;;  %vm1687_vm13 = vcmask 254976   ;;  %vm1731_vm14 = vcmask 1024  }
  0x1d   :  { %2157 = vmatpush3.msra.mxu1 %v302_v52  ;;  %2146 = vmatpush3.msra.mxu0 %v2582_v31  ;;  %150 = vst.msk [vmem:[#allocation2 + $0x8] sm:$0xff] %vm148_vm12, %v2452_v4  ;;  %149 = vst.msk [vmem:[#allocation2] sm:$0xff] %vm148_vm12, %v2452_v4  ;;  %vm1449_vm15 = vcmask 23552  }
  0x1e   :  { %2158 = vmatprep.subr.mxu1 %v309_v53  ;;  %2147 = vmatprep.subr.mxu0 %v2585_v32 }
  0x1f   :  { %2159 = vmatpush3.msra.mxu1 %v309_v53  ;;  %2148 = vmatpush3.msra.mxu0 %v2585_v32 }
  0x20   :  { %2160 = vmatprep.subr.mxu1 %v316_v56  ;;  %2149 = vmatprep.subr.mxu0 %v2598_v36 }
  0x21   :  { %2161 = vmatpush3.msra.mxu1 %v316_v56  ;;  %2150 = vmatpush3.msra.mxu0 %v2598_v36 }
  0x22   :  { %2162 = vmatprep.subr.mxu1 %v323_v59  ;;  %2151 = vmatprep.subr.mxu0 %v2613_v40 }
  0x23   :  { %2163 = vmatpush3.msra.mxu1 %v323_v59  ;;  %2152 = vmatpush3.msra.mxu0 %v2613_v40 }
  0x24   :  { %2164 = vmatprep.subr.mxu1 %v330_v61  ;;  %2173 = vmatprep.subr.mxu0 %v2601_v37 }
  0x25   :  { %2165 = vmatpush3.msra.mxu1 %v330_v61  ;;  %v2743_v61 = vand.u32 4294901760, %v2534_v13 }
  0x26   :  { %2166 = vmatprep.subr.mxu1 %v337_v63 }
  0x27   :  { %2167 = vmatpush3.msra.mxu1 %v337_v63 }
  0x28   :  { %2168 = vmatprep.subr.mxu1 %v344_v0 }
  0x29   :  { %2169 = vmatpush3.msra.mxu1 %v344_v0  ;;  %v2759_v0 = vand.u32 4294901760, %v2529_v12 }
  0x2a   :  { %2190 = vmatprep.subr.mxu1 %v2579_v30 }
  0x8c   :  { %v159_v3 = vpop.permute.xlu0 %158  ;;  %v756_v56 = vpop.permute.xlu1 %755 }
  0x8d   :  { %vm163_vm2 = vcmp.eq.s32.totalorder %v159_v3, %v2677_v2  ;;  %vm760_vm4 = vcmp.eq.s32.totalorder %v756_v56, %v2677_v2 }
  0x8e   :  { %v2681_v5 = vsel %vm163_vm2, 1.0, %v2452_v4 }
  0x8f   :  { %v178_v6 = vsel %vm176_vm1, %v2681_v5, 0  ;;  %2170 = vmatprep.mubr.msk.f32.mxu1 %vm176_vm1, %v2681_v5 }
  0x90   :  { %v260_v18 = vsub.f32 %v178_v6, %v178_v6  ;;  %v162_v19 = vpop.permute.xlu0 %161  ;;  %v2778_v6 = vand.u32 4294901760, %v2524_v11 }
  0x91   :  { %vm164_vm3 = vcmp.eq.s32.totalorder %v162_v19, %v2677_v2  ;;  %v768_v59 = vpop.permute.xlu1 %767 }
  0x92   :  { %v2689_v20 = vsel %vm164_vm3, 1.0, %v2452_v4  ;;  %v261_v23 = vand.u32 4294901760, %v260_v18  ;;  %vm772_vm5 = vcmp.eq.s32.totalorder %v768_v59, %v2677_v2 }
  0x93   :  { %v181_v41 = vsel %vm176_vm1, %v2689_v20, 0  ;;  %2171 = vmatmul.mubr.msk.f32.vlgmr.msra.gmra.mxu1 %vm176_vm1, %v2689_v20  ;;  %v2011_v63 = vsel %vm772_vm5, 1.0, %v2452_v4 }
  0x94   :  { %v2695_v47 = vsub.f32 %v181_v41, %v181_v41  ;;  %2191 = vmatpush3.msra.mxu1 %v2579_v30  ;;  %2204 = vmatprep.mubr.f32.mxu1 %v261_v23  ;;  %v262_v48 = vsub.f32 %v260_v18, %v261_v23  ;;  %v2808_v41 = vsub.f32 %v2524_v11, %v2778_v6 }
  0x95   :  { %2192 = vmatprep.subr.mxu1 %v2563_v24 }
  0x96   :  { %2193 = vmatpush3.msra.mxu1 %v2563_v24  ;;  %v263_v49 = vand.u32 4294901760, %v262_v48  ;;  %v271_v52 = vand.u32 4294901760, %v2695_v47  ;;  %v759_v48 = vpop.permute.xlu0 %758  ;;  %v2836_v56 = vand.u32 4294901760, %v2808_v41 }
  0x97   :  { %2194 = vmatprep.subr.mxu1 %v2566_v25  ;;  %vm761_vm8 = vcmp.eq.s32.totalorder %v759_v48, %v2677_v2 }
  0x98   :  { %2195 = vmatpush3.msra.mxu1 %v2566_v25  ;;  %2153 = vmatprep.mubr.f32.mxu0 %v263_v49  ;;  %v272_v53 = vsub.f32 %v2695_v47, %v271_v52 }
  0x99   :  { %2196 = vmatprep.subr.mxu1 %v2582_v31 }
  0x9a   :  { %2197 = vmatpush3.msra.mxu1 %v2582_v31  ;;  %v273_v54 = vand.u32 4294901760, %v272_v53 }
  0x9b   :  { %2198 = vmatprep.subr.mxu1 %v2585_v32 }
  0x9c   :  { %2199 = vmatpush3.msra.mxu1 %v2585_v32  ;;  %2154 = vmatmul.mubr.f32.vlgmr.msra.gmra.mxu0 %v273_v54 }
  0x9d   :  { %2174 = vmatpush3.msra.mxu0 %v2601_v37  ;;  %2200 = vmatprep.subr.mxu1 %v2598_v36  ;;  %v2724_v37 = vand.u32 4294901760, %v2539_v14 }
  0x9e   :  { %2175 = vmatprep.subr.mxu0 %v2591_v34  ;;  %2187 = vmatprep.mubr.f32.mxu0 %v260_v18  ;;  %v2791_v18 = vand.u32 4294901760, %v2519_v10 }
  0x9f   :  { %2201 = vmatpush3.msra.mxu1 %v2598_v36  ;;  %2176 = vmatpush3.msra.mxu0 %v2591_v34  ;;  %v2729_v34 = vsub.f32 %v2549_v16, %v2712_v57 }
  0xa0   :  { %2202 = vmatprep.subr.mxu1 %v2613_v40  ;;  %2177 = vmatprep.subr.mxu0 %v2595_v35  ;;  %v2822_v49 = vsub.f32 %v2519_v10, %v2791_v18 }
  0xa1   :  { %2203 = vmatpush3.msra.mxu1 %v2613_v40  ;;  %2178 = vmatpush3.msra.mxu0 %v2595_v35  ;;  %v2740_v35 = vsub.f32 %v2544_v15, %v2719_v60  ;;  %v2755_v62 = vand.u32 4294901760, %v2729_v34 }
  0xa2   :  { %2205 = vmatmul.mubr.f32.vlgmr.msra.gmra.mxu1 %v271_v52  ;;  %2224 = vmatprep.subr.mxu1 %v2579_v30  ;;  %v2825_v52 = vand.u32 4294901760, %v2509_v8 }
  0xa3   :  { %2179 = vmatprep.subr.mxu0 %v2605_v38  ;;  %2225 = vmatpush3.msra.mxu1 %v2579_v30  ;;  %v2749_v30 = vsub.f32 %v2539_v14, %v2724_v37 }
  0xa4   :  { %2238 = vmatprep.mubr.msk.f32.mxu1 %vm176_vm1, %v2681_v5  ;;  %2180 = vmatpush3.msra.mxu0 %v2605_v38  ;;  %v2009_v38 = vsel %vm760_vm4, 1.0, %v2452_v4 }
  0xa5   :  { %2226 = vmatprep.subr.mxu1 %v2563_v24  ;;  %2181 = vmatprep.subr.mxu0 %v2609_v39  ;;  %v778_v1 = vsub.f32 %v2009_v38, %v2011_v63  ;;  %v2775_v3 = vand.u32 4294901760, %v2749_v30  ;;  %v2853_v38 = vand.u32 4294901760, %v2822_v49  ;;  %v2857_v63 = vsub.f32 %v2509_v8, %v2825_v52 }
  0xa6   :  { %2227 = vmatpush3.msra.mxu1 %v2563_v24  ;;  %2182 = vmatpush3.msra.mxu0 %v2609_v39  ;;  %v2766_v24 = vand.u32 4294901760, %v2740_v35  ;;  %v2770_v39 = vsub.f32 %v2534_v13, %v2743_v61 }
  0xa7   :  { %2228 = vmatprep.subr.mxu1 %v2566_v25  ;;  %2183 = vmatprep.subr.mxu0 %v2632_v46  ;;  %v792_v19 = vsel %vm790_vm6, %v778_v1, 0  ;;  %v922_v23 = vsub.f32 %v2749_v30, %v2775_v3  ;;  %v2880_v48 = vand.u32 4294901760, %v2857_v63 }
  0xa8   :  { %2229 = vmatpush3.msra.mxu1 %v2566_v25  ;;  %2184 = vmatpush3.msra.mxu0 %v2632_v46  ;;  %v908_v25 = vsub.f32 %v2729_v34, %v2755_v62  ;;  %v2786_v46 = vsub.f32 %v2529_v12, %v2759_v0  ;;  %v2829_v53 = vand.u32 4294901760, %v792_v19 }
  0xa9   :  { %2230 = vmatprep.subr.mxu1 %v2582_v31  ;;  %2185 = vmatprep.subr.mxu0 %v2647_v51 }
  0xaa   :  { %2231 = vmatpush3.msra.mxu1 %v2582_v31  ;;  %2186 = vmatpush3.msra.mxu0 %v2647_v51  ;;  %v915_v31 = vsub.f32 %v2740_v35, %v2766_v24  ;;  %v2798_v51 = vand.u32 4294901760, %v2770_v39  ;;  %v2860_v1 = vsub.f32 %v792_v19, %v2829_v53 }
  0xab   :  { %2232 = vmatprep.subr.mxu1 %v2585_v32  ;;  %2188 = vmatmul.mubr.f32.vlgmr.msra.gmra.mxu0 %v2695_v47  ;;  %v2816_v47 = vand.u32 4294901760, %v2786_v46 }
  0xac   :  { %2207 = vmatprep.subr.mxu0 %v2624_v44  ;;  %2233 = vmatpush3.msra.mxu1 %v2585_v32  ;;  %v2811_v32 = vand.u32 4294901760, %v2514_v9  ;;  %v916_v54 = vand.u32 4294901760, %v915_v31  ;;  %v2010_v31 = vsel %vm761_vm8, 1.0, %v2452_v4 }
  0xad   :  { %2208 = vmatpush3.msra.mxu0 %v2624_v44  ;;  %2221 = vmatprep.mubr.msk.f32.mxu0 %vm176_vm1, %v2681_v5  ;;  %v909_v44 = vand.u32 4294901760, %v908_v25  ;;  %v771_v5 = vpop.permute.xlu1 %770 }
  0xae   :  { %2234 = vmatprep.subr.mxu1 %v2598_v36  ;;  %2209 = vmatprep.subr.mxu0 %v2617_v42  ;;  %v2840_v59 = vsub.f32 %v2514_v9, %v2811_v32  ;;  %vm773_vm7 = vcmp.eq.s32.totalorder %v771_v5, %v2677_v2  ;;  %v950_v5 = vsub.f32 %v2822_v49, %v2853_v38 }
  0xaf   :  { %2235 = vmatpush3.msra.mxu1 %v2598_v36  ;;  %2210 = vmatpush3.msra.mxu0 %v2617_v42  ;;  %v929_v36 = vsub.f32 %v2770_v39, %v2798_v51  ;;  %v923_v42 = vand.u32 4294901760, %v922_v23  ;;  %v2012_v25 = vsel %vm773_vm7, 1.0, %v2452_v4  ;;  %v943_v23 = vsub.f32 %v2808_v41, %v2836_v56 }
  0xb0   :  { %2236 = vmatprep.subr.mxu1 %v2613_v40  ;;  %2211 = vmatprep.subr.mxu0 %v2620_v43 }
  0xb1   :  { %2237 = vmatpush3.msra.mxu1 %v2613_v40  ;;  %2212 = vmatpush3.msra.mxu0 %v2620_v43  ;;  %v936_v40 = vsub.f32 %v2786_v46, %v2816_v47  ;;  %v2849_v43 = vand.u32 4294901760, %v2504_v7  ;;  %v930_v2 = vand.u32 4294901760, %v929_v36  ;;  %v944_v36 = vand.u32 4294901760, %v943_v23 }
  0xb2   :  { %2239 = vmatmul.mubr.msk.f32.vlgmr.msra.gmra.mxu1 %vm176_vm1, %v2689_v20  ;;  %2264 = vmatprep.subr.mxu1 %v909_v44 }
  0xb3   :  { %2213 = vmatprep.subr.mxu0 %v2627_v45  ;;  %2265 = vmatpush3.msra.mxu1 %v909_v44  ;;  %v2869_v44 = vand.u32 4294901760, %v2840_v59  ;;  %v937_v19 = vand.u32 4294901760, %v936_v40 }
  0xb4   :  { %2214 = vmatpush3.msra.mxu0 %v2627_v45  ;;  %2266 = vmatprep.subr.mxu1 %v916_v54  ;;  %v2874_v45 = vsub.f32 %v2504_v7, %v2849_v43 }
  0xb5   :  { %2215 = vmatprep.subr.mxu0 %v2642_v50  ;;  %2267 = vmatpush3.msra.mxu1 %v916_v54  ;;  %v779_v54 = vsub.f32 %v2010_v31, %v2012_v25  ;;  %v957_v40 = vsub.f32 %v2840_v59, %v2869_v44  ;;  %v964_v25 = vsub.f32 %v2857_v63, %v2880_v48 }
  0xb6   :  { %2216 = vmatpush3.msra.mxu0 %v2642_v50  ;;  %2268 = vmatprep.subr.mxu1 %v923_v42  ;;  %v874_v50 = vand.u32 4294901760, %v2860_v1 }
  0xb7   :  { %2217 = vmatprep.subr.mxu0 %v2655_v55  ;;  %2269 = vmatpush3.msra.mxu1 %v923_v42  ;;  %v2889_v42 = vand.u32 4294901760, %v2874_v45  ;;  %v958_v31 = vand.u32 4294901760, %v957_v40 }
  0xb8   :  { %2218 = vmatpush3.msra.mxu0 %v2655_v55  ;;  %2270 = vmatprep.subr.mxu1 %v930_v2  ;;  %v951_v55 = vand.u32 4294901760, %v950_v5 }
  0xb9   :  { %2219 = vmatprep.subr.mxu0 %v2661_v58  ;;  %2271 = vmatpush3.msra.mxu1 %v930_v2  ;;  %v795_v2 = vsel %vm790_vm6, %v779_v54, 0 }
  0xba   :  { %2220 = vmatpush3.msra.mxu0 %v2661_v58  ;;  %2272 = vmatprep.subr.mxu1 %v937_v19  ;;  %v875_v58 = vsub.f32 %v2860_v1, %v874_v50  ;;  %v2903_v23 = vand.u32 4294901760, %v795_v2 }
  0xbb   :  { %2222 = vmatmul.mubr.msk.f32.vlgmr.msra.gmra.mxu0 %vm176_vm1, %v2689_v20  ;;  %2241 = vmatprep.subr.mxu0 %v2712_v57  ;;  %v971_v20 = vsub.f32 %v2874_v45, %v2889_v42 }
  0xbc   :  { %2273 = vmatpush3.msra.mxu1 %v937_v19  ;;  %2242 = vmatpush3.msra.mxu0 %v2712_v57  ;;  %v965_v19 = vand.u32 4294901760, %v964_v25  ;;  %v876_v5 = vand.u32 4294901760, %v875_v58 }
  0xbd   :  { %2274 = vmatprep.subr.mxu1 %v944_v36  ;;  %2243 = vmatprep.subr.mxu0 %v2719_v60  ;;  %v972_v54 = vand.u32 4294901760, %v971_v20 }
  0xbe   :  { %2275 = vmatpush3.msra.mxu1 %v944_v36  ;;  %2244 = vmatpush3.msra.mxu0 %v2719_v60  ;;  %v2910_v36 = vsub.f32 %v795_v2, %v2903_v23 }
  0xbf   :  { %2276 = vmatprep.subr.mxu1 %v951_v55  ;;  %2245 = vmatprep.subr.mxu0 %v2724_v37 }
  0xc0   :  { %2277 = vmatpush3.msra.mxu1 %v951_v55  ;;  %2284 = vmatprep.mubr.f32.mxu1 %v2829_v53  ;;  %v884_v40 = vand.u32 4294901760, %v2910_v36 }
  0xc1   :  { %2246 = vmatpush3.msra.mxu0 %v2724_v37  ;;  %2278 = vmatprep.subr.mxu1 %v958_v31 }
  0xc2   :  { %2247 = vmatprep.subr.mxu0 %v2743_v61  ;;  %2279 = vmatpush3.msra.mxu1 %v958_v31  ;;  %v885_v55 = vsub.f32 %v2910_v36, %v884_v40 }
  0xc3   :  { %2248 = vmatpush3.msra.mxu0 %v2743_v61  ;;  %2280 = vmatprep.subr.mxu1 %v965_v19 }
  0xc4   :  { %2249 = vmatprep.subr.mxu0 %v2759_v0  ;;  %2261 = vmatprep.mubr.f32.mxu0 %v876_v5 }
  0xc5   :  { %2281 = vmatpush3.msra.mxu1 %v965_v19  ;;  %2250 = vmatpush3.msra.mxu0 %v2759_v0 }
  0xc6   :  { %2282 = vmatprep.subr.mxu1 %v972_v54  ;;  %2251 = vmatprep.subr.mxu0 %v2778_v6 }
  0xc7   :  { %2283 = vmatpush3.msra.mxu1 %v972_v54  ;;  %2252 = vmatpush3.msra.mxu0 %v2778_v6 }
  0xc8   :  { %2285 = vmatmul.mubr.f32.vlgmr.msra.gmra.mxu1 %v2903_v23  ;;  %2310 = vmatprep.subr.mxu1 %v2712_v57 }
  0xc9   :  { %2253 = vmatprep.subr.mxu0 %v2791_v18  ;;  %2311 = vmatpush3.msra.mxu1 %v2712_v57 }
  0xca   :  { %2330 = vmatprep.mubr.f32.mxu1 %v874_v50  ;;  %2254 = vmatpush3.msra.mxu0 %v2791_v18  ;;  %v886_v50 = vand.u32 4294901760, %v885_v55 }
  0xcb   :  { %2312 = vmatprep.subr.mxu1 %v2719_v60  ;;  %2255 = vmatprep.subr.mxu0 %v2811_v32 }
  0xcc   :  { %2313 = vmatpush3.msra.mxu1 %v2719_v60  ;;  %2256 = vmatpush3.msra.mxu0 %v2811_v32 }
  0xcd   :  { %2314 = vmatprep.subr.mxu1 %v2724_v37  ;;  %2257 = vmatprep.subr.mxu0 %v2825_v52 }
  0xce   :  { %2315 = vmatpush3.msra.mxu1 %v2724_v37  ;;  %2258 = vmatpush3.msra.mxu0 %v2825_v52 }
  0xcf   :  { %2316 = vmatprep.subr.mxu1 %v2743_v61  ;;  %2259 = vmatprep.subr.mxu0 %v2849_v43 }
  0xd0   :  { %2317 = vmatpush3.msra.mxu1 %v2743_v61  ;;  %2260 = vmatpush3.msra.mxu0 %v2849_v43 }
  0xd1   :  { %2318 = vmatprep.subr.mxu1 %v2759_v0  ;;  %2262 = vmatmul.mubr.f32.vlgmr.msra.gmra.mxu0 %v886_v50 }
  0xd2   :  { %2287 = vmatprep.subr.mxu0 %v2729_v34  ;;  %2319 = vmatpush3.msra.mxu1 %v2759_v0 }
  0xd3   :  { %2288 = vmatpush3.msra.mxu0 %v2729_v34  ;;  %2307 = vmatprep.mubr.f32.mxu0 %v2860_v1 }
  0xd4   :  { %2320 = vmatprep.subr.mxu1 %v2778_v6  ;;  %2289 = vmatprep.subr.mxu0 %v2740_v35 }
  0xd5   :  { %2321 = vmatpush3.msra.mxu1 %v2778_v6  ;;  %2290 = vmatpush3.msra.mxu0 %v2740_v35 }
  0xd6   :  { %2322 = vmatprep.subr.mxu1 %v2791_v18  ;;  %2291 = vmatprep.subr.mxu0 %v2749_v30 }
  0xd7   :  { %2323 = vmatpush3.msra.mxu1 %v2791_v18  ;;  %2292 = vmatpush3.msra.mxu0 %v2749_v30 }
  0xd8   :  { %2324 = vmatprep.subr.mxu1 %v2811_v32  ;;  %2293 = vmatprep.subr.mxu0 %v2770_v39 }
  0xd9   :  { %2325 = vmatpush3.msra.mxu1 %v2811_v32  ;;  %2294 = vmatpush3.msra.mxu0 %v2770_v39 }
  0xda   :  { %2326 = vmatprep.subr.mxu1 %v2825_v52  ;;  %2295 = vmatprep.subr.mxu0 %v2786_v46 }
  0xdb   :  { %2327 = vmatpush3.msra.mxu1 %v2825_v52  ;;  %2296 = vmatpush3.msra.mxu0 %v2786_v46 }
  0xdc   :  { %2328 = vmatprep.subr.mxu1 %v2849_v43  ;;  %2297 = vmatprep.subr.mxu0 %v2808_v41 }
  0xdd   :  { %2329 = vmatpush3.msra.mxu1 %v2849_v43  ;;  %2298 = vmatpush3.msra.mxu0 %v2808_v41 }
  0xde   :  { %2331 = vmatmul.mubr.f32.vlgmr.msra.gmra.mxu1 %v884_v40  ;;  %2356 = vmatprep.subr.mxu1 %v2712_v57 }
  0xdf   :  { %2299 = vmatprep.subr.mxu0 %v2822_v49  ;;  %2357 = vmatpush3.msra.mxu1 %v2712_v57  ;;  %v154_v57 = vcvt.s32.f32 %v2577_v29 }
  0xe0   :  { %2376 = vmatprep.mubr.f32.mxu1 %v2829_v53  ;;  %2300 = vmatpush3.msra.mxu0 %v2822_v49 }
  0xe1   :  { %2358 = vmatprep.subr.mxu1 %v2719_v60  ;;  %2301 = vmatprep.subr.mxu0 %v2840_v59  ;;  %v1453_v5 = vsub.f32 1.0, %v154_v57 }
  0xe2   :  { %2359 = vmatpush3.msra.mxu1 %v2719_v60  ;;  %2302 = vmatpush3.msra.mxu0 %v2840_v59  ;;  %v3017_v60 = vcvt.s32.f32 %v2554_v17 }
  0xe3   :  { %2360 = vmatprep.subr.mxu1 %v2724_v37  ;;  %2303 = vmatprep.subr.mxu0 %v2857_v63 }
  0xe4   :  { %2361 = vmatpush3.msra.mxu1 %v2724_v37  ;;  %2304 = vmatpush3.msra.mxu0 %v2857_v63  ;;  %v2454_v37 = vmov 64  }
  0xe5   :  { %2362 = vmatprep.subr.mxu1 %v2743_v61  ;;  %2305 = vmatprep.subr.mxu0 %v2874_v45 }
  0xe6   :  { %2363 = vmatpush3.msra.mxu1 %v2743_v61  ;;  %2306 = vmatpush3.msra.mxu0 %v2874_v45 }
  0xe7   :  { %2364 = vmatprep.subr.mxu1 %v2759_v0  ;;  %2308 = vmatmul.mubr.f32.vlgmr.msra.gmra.mxu0 %v2910_v36 }
  0xe8   :  { %2333 = vmatprep.subr.mxu0 %v2755_v62  ;;  %2365 = vmatpush3.msra.mxu1 %v2759_v0 }
  0xe9   :  { %2334 = vmatpush3.msra.mxu0 %v2755_v62  ;;  %2353 = vmatprep.mubr.f32.mxu0 %v2829_v53 }
  0xea   :  { %2366 = vmatprep.subr.mxu1 %v2778_v6  ;;  %2335 = vmatprep.subr.mxu0 %v2766_v24 }
  0xeb   :  { %2367 = vmatpush3.msra.mxu1 %v2778_v6  ;;  %2336 = vmatpush3.msra.mxu0 %v2766_v24 }
  0xec   :  { %2368 = vmatprep.subr.mxu1 %v2791_v18  ;;  %2337 = vmatprep.subr.mxu0 %v2775_v3 }
  0xed   :  { %2369 = vmatpush3.msra.mxu1 %v2791_v18  ;;  %2338 = vmatpush3.msra.mxu0 %v2775_v3 }
  0xee   :  { %2370 = vmatprep.subr.mxu1 %v2811_v32  ;;  %2339 = vmatprep.subr.mxu0 %v2798_v51 }
  0xef   :  { %2371 = vmatpush3.msra.mxu1 %v2811_v32  ;;  %2340 = vmatpush3.msra.mxu0 %v2798_v51 }
  0xf0   :  { %2372 = vmatprep.subr.mxu1 %v2825_v52  ;;  %2341 = vmatprep.subr.mxu0 %v2816_v47 }
  0xf1   :  { %2373 = vmatpush3.msra.mxu1 %v2825_v52  ;;  %2342 = vmatpush3.msra.mxu0 %v2816_v47 }
  0xf2   :  { %2374 = vmatprep.subr.mxu1 %v2849_v43  ;;  %2343 = vmatprep.subr.mxu0 %v2836_v56 }
  0xf3   :  { %2375 = vmatpush3.msra.mxu1 %v2849_v43  ;;  %2344 = vmatpush3.msra.mxu0 %v2836_v56 }
  0xf4   :  { %2377 = vmatmul.mubr.f32.vlgmr.msra.gmra.mxu1 %v2903_v23  ;;  %2345 = vmatprep.subr.mxu0 %v2853_v38 }
  0xf5   :  { %2346 = vmatpush3.msra.mxu0 %v2853_v38  ;;  %1458 = vrot.lane.b32.xlu1 %v154_v57, %s2453_s0 }
  0xf6   :  { %2347 = vmatprep.subr.mxu0 %v2869_v44  ;;  %1456 = vrot.lane.b32.xlu0 %v3017_v60, %s2453_s0 }
  0xf7   :  { %2348 = vmatpush3.msra.mxu0 %v2869_v44  ;;  %2414 = vset.pattern.permute.xlu0 %v2454_v37 }
  0xf8   :  { %2349 = vmatprep.subr.mxu0 %v2880_v48  ;;  %2415 = vset.pattern.permute.xlu1 %v2454_v37 }
  0xf9   :  { %2350 = vmatpush3.msra.mxu0 %v2880_v48 }
  0xfa   :  { %2351 = vmatprep.subr.mxu0 %v2889_v42 }
  0xfb   :  { %2352 = vmatpush3.msra.mxu0 %v2889_v42 }
  0xfc   :  { %2354 = vmatmul.mubr.f32.vlgmr.msra.gmra.mxu0 %v2903_v23 }
 0x153   :  { %v2172_v35 = vpop.f32.mrf.mxu1 }
 0x155   :  { %v381_v62 = vpop.f32.mrf.mxu1 }
 0x15c   :  { %v2155_v34 = vpop.f32.mrf.mxu0 }
 0x15d   :  { %v388_v41 = vadd.f32 %v2172_v35, %v2155_v34 }
 0x15e   :  { %v265_v61 = vpop.f32.mrf.mxu0 }
 0x15f   :  { %v382_v20 = vadd.f32 %v381_v62, %v265_v61 }
 0x162   :  { %v2206_v0 = vpop.f32.mrf.mxu1 }
 0x164   :  { %v560_v39 = vpop.f32.mrf.mxu1 }
 0x16b   :  { %v2189_v30 = vpop.f32.mrf.mxu0 }
 0x16c   :  { %v481_v47 = vadd.f32 %v2189_v30, %v388_v41  ;;  %v3042_v30 = vld [vmem:[#allocation3 + $0x28] sm:$0x3] }
 0x16d   :  { %v473_v24 = vpop.f32.mrf.mxu0 }
 0x16e   :  { %v569_v59 = vadd.f32 %v2206_v0, %v481_v47  ;;  %v474_v19 = vadd.f32 %v473_v24, %v382_v20  ;;  %v1459_v0 = vpop.permute.xlu1 %1458 }
 0x170   :  { %v561_v40 = vadd.f32 %v560_v39, %v474_v19 }
 0x172   :  { %v2240_v3 = vpop.f32.mrf.mxu1 }
 0x174   :  { %v744_v17 = vpop.f32.mrf.mxu1 }
 0x17b   :  { %v2223_v29 = vpop.f32.mrf.mxu0 }
 0x17c   :  { %v667_v38 = vadd.f32 %v2223_v29, %v569_v59 }
 0x17d   :  { %v660_v6 = vpop.f32.mrf.mxu0 }
 0x17e   :  { %v751_v42 = vadd.f32 %v2240_v3, %v667_v38  ;;  %v661_v50 = vadd.f32 %v660_v6, %v561_v40 }
 0x180   :  { %v745_v35 = vadd.f32 %v744_v17, %v661_v50  ;;  %v2429_v50 = vld [vmem:[#allocation3 + $0x8] sm:$0xff] }
 0x188   :  { %v2286_v18 = vpop.f32.mrf.mxu1 }
 0x18a   :  { %v1009_v52 = vpop.f32.mrf.mxu1 }
 0x191   :  { %v2263_v46 = vpop.f32.mrf.mxu0 }
 0x192   :  { %v1016_v49 = vadd.f32 %v2286_v18, %v2263_v46 }
 0x193   :  { %v878_v51 = vpop.f32.mrf.mxu0 }
 0x194   :  { %v1010_v58 = vadd.f32 %v1009_v52, %v878_v51 }
 0x19e   :  { %v2332_v56 = vpop.f32.mrf.mxu1 }
 0x1a0   :  { %v1197_v1 = vpop.f32.mrf.mxu1 }
 0x1a7   :  { %v2309_v32 = vpop.f32.mrf.mxu0 }
 0x1a8   :  { %v1115_v53 = vadd.f32 %v2309_v32, %v1016_v49 }
 0x1a9   :  { %v1107_v43 = vpop.f32.mrf.mxu0 }
 0x1aa   :  { %v1206_v63 = vadd.f32 %v2332_v56, %v1115_v53  ;;  %v1108_v23 = vadd.f32 %v1107_v43, %v1010_v58 }
 0x1ac   :  { %v1198_v36 = vadd.f32 %v1197_v1, %v1108_v23 }
 0x1b4   :  { %v2378_v48 = vpop.f32.mrf.mxu1 }
 0x1b6   :  { %v1393_v37 = vpop.f32.mrf.mxu1 }
 0x1bc   :  { %v2355_v44 = vpop.f32.mrf.mxu0 }
 0x1bd   :  { %v1313_v45 = vadd.f32 %v2355_v44, %v1206_v63 }
 0x1be   :  { %v1306_v54 = vpop.f32.mrf.mxu0 }
 0x1bf   :  { %v1400_v25 = vadd.f32 %v2378_v48, %v1313_v45  ;;  %v1307_v55 = vadd.f32 %v1306_v54, %v1198_v36 }
 0x1c1   :  { %v1404_v2 = vmul.f32 %v1400_v25, %v751_v42  ;;  %v1394_v34 = vadd.f32 %v1393_v37, %v1307_v55 }
 0x1c3   :  { %1416 = vrot.lane.b32.xlu0 %v1404_v2, %s2455_s21  ;;  %v1409_v31 = vsel %vm1405_vm9, %v1404_v2, 0.0  ;;  %v1403_v61 = vmul.f32 %v1394_v34, %v745_v35 }
 0x1c4   :  { %1410 = vadd.xlane.f32.xlu1 %v1409_v31 }
 0x1c7   :  { %1464 = vrot.lane.b32.xlu0 %v154_v57, %s2456_s22  ;;  %v1452_v57 = vsub.f32 1.0, %v3017_v60 }
 0x1cb   :  { %1472 = vrot.lane.b32.xlu0 %v1453_v5, %s2457_s23  ;;  %v2428_v5 = vld [vmem:[#allocation3 + $0x10] sm:$0xff] }
 0x1cf   :  { %1642 = vperm.xlu0 %2414, %v2587_v33  }
 0x1d3   :  { %1646 = vperm.xlu0 %2414, %v2572_v28  }
 0x1d5   :  { %1414 = vrot.lane.b32.xlu1 %v1403_v61, %s2455_s21 }
 0x1d7   :  { %1606 = vrot.lane.b32.xlu0 %v2587_v33, %s2455_s21 }
 0x1d9   :  { %1462 = vrot.lane.b32.xlu1 %v3017_v60, %s2456_s22 }
 0x1db   :  { %1608 = vrot.lane.b32.xlu0 %v2572_v28, %s2455_s21 }
 0x1dd   :  { %1470 = vrot.lane.b32.xlu1 %v1452_v57, %s2457_s23 }
 0x1df   :  { %1650 = vperm.xlu0 %2414, %v2570_v27  }
 0x1e1   :  { %1658 = vperm.xlu1 %2415, %v2558_v22  }
 0x1e3   :  { %1610 = vrot.lane.b32.xlu0 %v2570_v27, %s2455_s21 }
 0x1e5   :  { %1616 = vrot.lane.b32.xlu1 %v2556_v21, %s2455_s21 }
 0x1e7   :  { %1654 = vperm.xlu0 %2414, %v2568_v26  }
 0x1e9   :  { %1666 = vperm.xlu1 %2415, %v3042_v30  }
 0x1eb   :  { %1612 = vrot.lane.b32.xlu0 %v2568_v26, %s2455_s21 }
 0x1ed   :  { %1705 = vrot.lane.b32.xlu1 %v2568_v26, %s2458_s24  ;;  %v1406_v26 = vsel %vm1405_vm9, %v1403_v61, 0.0 }
 0x1ef   :  { %1614 = vrot.lane.b32.xlu0 %v2558_v22, %s2455_s21 }
 0x1f1   :  { %1709 = vrot.lane.b32.xlu1 %v2556_v21, %s2458_s24 }
 0x1f3   :  { %1699 = vrot.lane.b32.xlu0 %v2587_v33, %s2458_s24 }
 0x1f5   :  { %1809 = vperm.xlu1 %2415, %v2504_v7  }
 0x1f7   :  { %1701 = vrot.lane.b32.xlu0 %v2572_v28, %s2458_s24 }
 0x1f9   :  { %1758 = vrot.lane.b32.xlu1 %v2504_v7, %s2455_s21 }
 0x1fb   :  { %1662 = vperm.xlu0 %2414, %v2556_v21   ;;  %v1457_v21 = vpop.permute.xlu0 %1456 }
 0x1fd   :  { %1817 = vperm.xlu1 %2415, %v2514_v9  }
 0x1ff   :  { %1703 = vrot.lane.b32.xlu0 %v2570_v27, %s2458_s24 }
 0x201   :  { %1821 = vperm.xlu1 %2415, %v2519_v10  }
 0x203   :  { %1618 = vrot.lane.b32.xlu0 %v3042_v30, %s2455_s21 }
 0x207   :  { %1707 = vrot.lane.b32.xlu0 %v2558_v22, %s2458_s24 }
 0x20b   :  { %1711 = vrot.lane.b32.xlu0 %v3042_v30, %s2458_s24 }
 0x20f   :  { %1813 = vperm.xlu0 %2414, %v2509_v8  }
 0x213   :  { %1760 = vrot.lane.b32.xlu0 %v2509_v8, %s2455_s21 }
 0x232   :  { %1407 = vadd.xlane.f32.xlu0 %v1406_v26 }
 0x235   :  { %v1417_v60 = vpop.permute.xlu0 %1416 }
 0x236   :  { %v1423_v62 = vsel %vm1405_vm9, %v1417_v60, 0.0  ;;  %v2430_v60 = vld [vmem:[#allocation3 + $0x20] sm:$0xff] }
 0x237   :  { %1424 = vadd.xlane.f32.xlu0 %v1423_v62 }
 0x239   :  { %v1465_v24 = vpop.permute.xlu0 %1464 }
 0x23a   :  { %v1477_v22 = vsel %vm1443_vm10, %v1459_v0, %v1465_v24 }
 0x23d   :  { %v1473_v29 = vpop.permute.xlu0 %1472 }
 0x23e   :  { %v3079_v39 = vsel %vm1446_vm11, %v1477_v22, %v1473_v29 }
 0x24a   :  { %v1643_v3 = vpop.permute.xlu0 %1642 }
 0x24d   :  { %v3085_v6 = vpop.xlane.xlu1 %1410  ;;  %1762 = vrot.lane.b32.xlu0 %v2514_v9, %s2455_s21 }
 0x24e   :  { %v1647_v46 = vpop.permute.xlu0 %1646 }
 0x251   :  { %v1415_v17 = vpop.permute.xlu1 %1414  ;;  %1764 = vrot.lane.b32.xlu0 %v2519_v10, %s2455_s21 }
 0x252   :  { %v1607_v18 = vpop.permute.xlu0 %1606  ;;  %v1420_v51 = vsel %vm1405_vm9, %v1415_v17, 0.0 }
 0x253   :  { %v1627_v41 = vsub.f32 %v2587_v33, %v1607_v18  ;;  %1421 = vadd.xlane.f32.xlu1 %v1420_v51 }
 0x255   :  { %v1634_v32 = vand.u32 2147483647, %v1627_v41  ;;  %v1463_v47 = vpop.permute.xlu1 %1462  ;;  %1766 = vrot.lane.b32.xlu0 %v2524_v11, %s2455_s21 }
 0x256   :  { %v1476_v4 = vsel %vm1443_vm10, %v1457_v21, %v1463_v47  ;;  %v1609_v49 = vpop.permute.xlu0 %1608 }
 0x257   :  { %v1669_v52 = vmul.f32 %v1643_v3, %v1634_v32  ;;  %v1628_v53 = vsub.f32 %v2572_v28, %v1609_v49 }
 0x259   :  { %v1635_v56 = vand.u32 2147483647, %v1628_v53  ;;  %v1471_v59 = vpop.permute.xlu1 %1470  ;;  %1888 = vrot.lane.b32.xlu0 %v2509_v8, %s2458_s24  ;;  %v1676_v38 = vsel %vm1405_vm9, %v1669_v52, 0.0 }
 0x25a   :  { %v3100_v43 = vsel %vm1446_vm11, %v1476_v4, %v1471_v59  ;;  %v1651_v33 = vpop.permute.xlu0 %1650 }
 0x25b   :  { %v1670_v63 = vmul.f32 %v1647_v46, %v1635_v56 }
 0x25d   :  { %v1677_v1 = vsel %vm1405_vm9, %v1670_v63, 0.0  ;;  %1768 = vrot.lane.b32.xlu0 %v2529_v12, %s2455_s21  ;;  %v1659_v44 = vpop.permute.xlu1 %1658 }
 0x25e   :  { %v1678_v45 = vadd.f32 %v1677_v1, %v1676_v38  ;;  %v1611_v28 = vpop.permute.xlu0 %1610 }
 0x25f   :  { %v1629_v48 = vsub.f32 %v2570_v27, %v1611_v28 }
 0x261   :  { %v1636_v42 = vand.u32 2147483647, %v1629_v48  ;;  %1833 = vperm.xlu0 %2414, %v2534_v13   ;;  %v1617_v25 = vpop.permute.xlu1 %1616 }
 0x262   :  { %v1655_v2 = vpop.permute.xlu0 %1654  ;;  %v1632_v62 = vsub.f32 %v2430_v60, %v1617_v25 }
 0x263   :  { %v1671_v58 = vmul.f32 %v1651_v33, %v1636_v42 }
 0x264   :  { %1825 = vperm.xlu1 %2415, %v2524_v11   ;;  %v1639_v46 = vand.u32 2147483647, %v1632_v62 }
 0x265   :  { %v1679_v31 = vsel %vm1405_vm9, %v1671_v58, 0.0  ;;  %1892 = vrot.lane.b32.xlu0 %v2519_v10, %s2458_s24  ;;  %v1667_v20 = vpop.permute.xlu1 %1666 }
 0x266   :  { %v1680_v23 = vadd.f32 %v1679_v31, %v1678_v45  ;;  %v1613_v19 = vpop.permute.xlu0 %1612 }
 0x267   :  { %v1630_v54 = vsub.f32 %v2428_v5, %v1613_v19 }
 0x268   :  { %1886 = vrot.lane.b32.xlu1 %v2504_v7, %s2458_s24 }
 0x269   :  { %v1637_v27 = vand.u32 2147483647, %v1630_v54  ;;  %1772 = vrot.lane.b32.xlu0 %v2539_v14, %s2455_s21  ;;  %v1706_v36 = vpop.permute.xlu1 %1705 }
 0x26a   :  { %v1615_v40 = vpop.permute.xlu0 %1614  ;;  %v1725_v59 = vsel %vm1443_vm10, %v1706_v36, 0.0 }
 0x26b   :  { %v1672_v55 = vmul.f32 %v1655_v2, %v1637_v27  ;;  %v1631_v37 = vsub.f32 %v2429_v50, %v1615_v40 }
 0x26c   :  { %1829 = vperm.xlu1 %2415, %v2529_v12  }
 0x26d   :  { %v1681_v34 = vsel %vm1405_vm9, %v1672_v55, 0.0  ;;  %v1638_v35 = vand.u32 2147483647, %v1631_v37  ;;  %1841 = vperm.xlu0 %2414, %v2544_v15   ;;  %v1710_v61 = vpop.permute.xlu1 %1709 }
 0x26e   :  { %v1682_v57 = vadd.f32 %v1681_v34, %v1680_v23  ;;  %v1700_v21 = vpop.permute.xlu0 %1699  ;;  %v1729_v28 = vsel %vm1443_vm10, %v1710_v61, 0.0 }
 0x26f   :  { %v1673_v26 = vmul.f32 %v1659_v44, %v1638_v35  ;;  %v1720_v24 = vsel %vm1443_vm10, %v1700_v21, 0.0 }
 0x270   :  { %1890 = vrot.lane.b32.xlu1 %v2514_v9, %s2458_s24 }
 0x271   :  { %v1683_v0 = vsel %vm1405_vm9, %v1673_v26, 0.0  ;;  %v1810_v22 = vpop.permute.xlu1 %1809  ;;  %1896 = vrot.lane.b32.xlu0 %v2529_v12, %s2458_s24 }
 0x272   :  { %v1684_v29 = vadd.f32 %v1683_v0, %v1682_v57  ;;  %v1702_v3 = vpop.permute.xlu0 %1701 }
 0x273   :  { %v1721_v17 = vsel %vm1443_vm10, %v1702_v3, 0.0 }
 0x274   :  { %v1722_v18 = vadd.f32 %v1721_v17, %v1720_v24  ;;  %1770 = vrot.lane.b32.xlu1 %v2534_v13, %s2455_s21 }
 0x275   :  { %v1759_v51 = vpop.permute.xlu1 %1758 }
 0x276   :  { %v1663_v41 = vpop.permute.xlu0 %1662  ;;  %v1788_v32 = vsub.f32 %v2504_v7, %v1759_v51 }
 0x277   :  { %v1674_v47 = vmul.f32 %v1663_v41, %v1639_v46 }
 0x278   :  { %1837 = vperm.xlu1 %2415, %v2539_v14   ;;  %v1798_v4 = vand.u32 2147483647, %v1788_v32 }
 0x279   :  { %v1685_v49 = vsel %vm1405_vm9, %v1674_v47, 0.0  ;;  %v1818_v62 = vpop.permute.xlu1 %1817 }
 0x27a   :  { %v1704_v52 = vpop.permute.xlu0 %1703  ;;  %v1848_v53 = vmul.f32 %v1810_v22, %v1798_v4  ;;  %v1686_v56 = vadd.f32 %v1685_v49, %v1684_v29 }
 0x27b   :  { %v1723_v33 = vsel %vm1443_vm10, %v1704_v52, 0.0 }
 0x27c   :  { %v1724_v38 = vadd.f32 %v1723_v33, %v1722_v18  ;;  %1894 = vrot.lane.b32.xlu1 %v2524_v11, %s2458_s24  ;;  %v1858_v40 = vsel %vm1405_vm9, %v1848_v53, 0.0 }
 0x27d   :  { %v1822_v51 = vpop.permute.xlu1 %1821 }
 0x27e   :  { %v1619_v63 = vpop.permute.xlu0 %1618  ;;  %v1726_v1 = vadd.f32 %v1725_v59, %v1724_v38 }
 0x27f   :  { %v1633_v7 = vsub.f32 %v3042_v30, %v1619_v63 }
 0x280   :  { %1774 = vrot.lane.b32.xlu1 %v2544_v15, %s2455_s21 }
 0x281   :  { %v1640_v44 = vand.u32 2147483647, %v1633_v7 }
 0x282   :  { %v1708_v45 = vpop.permute.xlu0 %1707 }
 0x283   :  { %v1675_v48 = vmul.f32 %v1667_v20, %v1640_v44  ;;  %v1727_v42 = vsel %vm1443_vm10, %v1708_v45, 0.0 }
 0x284   :  { %v1728_v25 = vadd.f32 %v1727_v42, %v1726_v1  ;;  %1845 = vperm.xlu1 %2415, %v2549_v16  }
 0x285   :  { %v1688_v2 = vsel %vm1687_vm13, %v1675_v48, 0.0 }
 0x286   :  { %v1712_v58 = vpop.permute.xlu0 %1711  ;;  %v1730_v31 = vadd.f32 %v1729_v28, %v1728_v25  ;;  %v3141_v23 = vadd.f32 %v1688_v2, %v1686_v56 }
 0x287   :  { %v1732_v30 = vsel %vm1731_vm14, %v1712_v58, 0.0 }
 0x288   :  { %v3143_v19 = vadd.f32 %v1732_v30, %v1730_v31 }
 0x28a   :  { %v1814_v5 = vpop.permute.xlu0 %1813 }
 0x28e   :  { %v1761_v54 = vpop.permute.xlu0 %1760 }
 0x28f   :  { %v1789_v27 = vsub.f32 %v2509_v8, %v1761_v54 }
 0x291   :  { %v1799_v36 = vand.u32 2147483647, %v1789_v27 }
 0x293   :  { %v1849_v20 = vmul.f32 %v1814_v5, %v1799_v36 }
 0x295   :  { %v1859_v55 = vsel %vm1405_vm9, %v1849_v20, 0.0 }
 0x296   :  { %v1860_v50 = vadd.f32 %v1859_v55, %v1858_v40 }
 0x2bb   :  { %v1408_v37 = vpop.xlane.xlu0 %1407 }
 0x2c0   :  { %v1425_v34 = vpop.xlane.xlu0 %1424 }
 0x2c1   :  { %v1440_v35 = vsub.f32 0.0, %v1425_v34  ;;  %v1442_v61 = vadd.f32 %v1425_v34, %v3085_v6 }
 0x2c3   :  { %v1445_v57 = vsel %vm1443_vm10, %v3085_v6, %v1440_v35 }
 0x2c4   :  { %v1448_v21 = vsel %vm1446_vm11, %v1445_v57, %v1425_v34  ;;  %v1763_v26 = vpop.permute.xlu0 %1762 }
 0x2c5   :  { %v1451_v8 = vsel %vm1449_vm15, %v1448_v21, %v1442_v61  ;;  %v1790_v60 = vsub.f32 %v2514_v9, %v1763_v26  ;;  %v1481_v26 = vsel %vm1449_vm15, %v3079_v39, 1.0 }
 0x2c6   :  { %v1487_v0 = vand.u32 2147483647, %v1451_v8 }
 0x2c7   :  { %v1800_v24 = vand.u32 2147483647, %v1790_v60  ;;  %v1483_v60 = vld [vmem:[#allocation2 + $0x8] sm:$0xff] }
 0x2c8   :  { %v1489_v22 = vsub.f32 0.0, %v1487_v0  ;;  %v1765_v29 = vpop.permute.xlu0 %1764 }
 0x2c9   :  { %v1850_v3 = vmul.f32 %v1818_v62, %v1800_v24  ;;  %v1791_v46 = vsub.f32 %v2519_v10, %v1765_v29 }
 0x2ca   :  { %v1492_v17 = vmul.f32 1.442695, %v1489_v22 }
 0x2cb   :  { %v1861_v18 = vsel %vm1405_vm9, %v1850_v3, 0.0  ;;  %v1801_v6 = vand.u32 2147483647, %v1791_v46 }
 0x2cc   :  { %2416 = vpow2.f32 %v1492_v17  ;;  %v1862_v41 = vadd.f32 %v1861_v18, %v1860_v50  ;;  %v1767_v47 = vpop.permute.xlu0 %1766  ;;  %v1485_v50 = vmin.f32 %v1451_v8, 0.0 }
 0x2cd   :  { %v1851_v32 = vmul.f32 %v1822_v51, %v1801_v6  ;;  %v1792_v53 = vsub.f32 %v2524_v11, %v1767_v47 }
 0x2cf   :  { %v1863_v4 = vsel %vm1405_vm9, %v1851_v32, 0.0  ;;  %v1802_v33 = vand.u32 2147483647, %v1792_v53 }
 0x2d0   :  { %v1864_v9 = vadd.f32 %v1863_v4, %v1862_v41  ;;  %v1889_v49 = vpop.permute.xlu0 %1888 }
 0x2d1   :  { %v1917_v25 = vsel %vm1443_vm10, %v1889_v49, 0.0 }
 0x2d4   :  { %v1769_v59 = vpop.permute.xlu0 %1768 }
 0x2d5   :  { %v1793_v28 = vsub.f32 %v2529_v12, %v1769_v59 }
 0x2d7   :  { %v1803_v5 = vand.u32 2147483647, %v1793_v28 }
 0x2d9   :  { %v2417_v52 = vpop.eup %2416 }
 0x2da   :  { %v1495_v56 = vadd.f32 1.0, %v2417_v52 }
 0x2dc   :  { %2418 = vlog2.f32 %v1495_v56  ;;  %v1422_v10 = vpop.xlane.xlu1 %1421  ;;  %v1834_v44 = vpop.permute.xlu0 %1833 }
 0x2dd   :  { %v1439_v38 = vsub.f32 0.0, %v1422_v10  ;;  %v1441_v63 = vadd.f32 %v1422_v10, %v1408_v37 }
 0x2df   :  { %v1444_v1 = vsel %vm1443_vm10, %v1408_v37, %v1439_v38 }
 0x2e0   :  { %v1447_v7 = vsel %vm1446_vm11, %v1444_v1, %v1422_v10  ;;  %v1826_v45 = vpop.permute.xlu1 %1825  ;;  %v1893_v36 = vpop.permute.xlu0 %1892 }
 0x2e1   :  { %v3162_v48 = vsel %vm1449_vm15, %v1447_v7, %v1441_v63  ;;  %v1852_v42 = vmul.f32 %v1826_v45, %v1802_v33  ;;  %v1921_v62 = vsel %vm1443_vm10, %v1893_v36, 0.0 }
 0x2e2   :  { %v1486_v11 = vand.u32 2147483647, %v3162_v48 }
 0x2e3   :  { %v1865_v2 = vsel %vm1405_vm9, %v1852_v42, 0.0  ;;  %v1484_v42 = vmin.f32 %v3162_v48, 0.0 }
 0x2e4   :  { %v1488_v58 = vsub.f32 0.0, %v1486_v11  ;;  %v1866_v31 = vadd.f32 %v1865_v2, %v1864_v9  ;;  %v1887_v30 = vpop.permute.xlu1 %1886  ;;  %v1773_v61 = vpop.permute.xlu0 %1772  ;;  %v1480_v2 = vsel %vm1449_vm15, %v3100_v43, 1.0 }
 0x2e5   :  { %v1916_v54 = vsel %vm1443_vm10, %v1887_v30, 0.0  ;;  %v1795_v0 = vsub.f32 %v2539_v14, %v1773_v61 }
 0x2e6   :  { %v1490_v27 = vmul.f32 1.442695, %v1488_v58  ;;  %v1918_v20 = vadd.f32 %v1917_v25, %v1916_v54  ;;  %v1482_v58 = vld [vmem:[#allocation2] sm:$0xff] }
 0x2e7   :  { %v1805_v17 = vand.u32 2147483647, %v1795_v0 }
 0x2e8   :  { %2420 = vpow2.f32 %v1490_v27  ;;  %v1830_v12 = vpop.permute.xlu1 %1829  ;;  %v1842_v1 = vpop.permute.xlu0 %1841 }
 0x2e9   :  { %v2419_v40 = vpop.eup %2418  ;;  %v1853_v55 = vmul.f32 %v1830_v12, %v1803_v5 }
 0x2ea   :  { %v1499_v37 = vmul.f32 0.6931472, %v2419_v40 }
 0x2eb   :  { %v1867_v34 = vsel %vm1405_vm9, %v1853_v55, 0.0 }
 0x2ec   :  { %v1501_v35 = vsub.f32 %v1485_v50, %v1499_v37  ;;  %v1868_v57 = vadd.f32 %v1867_v34, %v1866_v31  ;;  %v1891_v21 = vpop.permute.xlu1 %1890 }
 0x2ed   :  { %v1919_v24 = vsel %vm1443_vm10, %v1891_v21, 0.0 }
 0x2ee   :  { %v1503_v22 = vmul.f32 %v1501_v35, %v1481_v26  ;;  %v1920_v29 = vadd.f32 %v1919_v24, %v1918_v20  ;;  %v1897_v20 = vpop.permute.xlu0 %1896 }
 0x2f0   :  { %v1505_v8 = vadd.f32 %v1503_v22, %v1483_v60  ;;  %v1771_v3 = vpop.permute.xlu1 %1770  ;;  %v1922_v46 = vadd.f32 %v1921_v62, %v1920_v29 }
 0x2f1   :  { %v1794_v18 = vsub.f32 %v2534_v13, %v1771_v3 }
 0x2f2   :  { %1508 = vst.msk [vmem:[#allocation2 + $0x8] sm:$0xff] %vm148_vm12, %v1505_v8 }
 0x2f3   :  { %v1804_v6 = vand.u32 2147483647, %v1794_v18 }
 0x2f4   :  { %v1838_v51 = vpop.permute.xlu1 %1837 }
 0x2f5   :  { %v2421_v39 = vpop.eup %2420  ;;  %v1854_v41 = vmul.f32 %v1834_v44, %v1804_v6  ;;  %v1855_v32 = vmul.f32 %v1838_v51, %v1805_v17 }
 0x2f6   :  { %v1494_v47 = vadd.f32 1.0, %v2421_v39 }
 0x2f7   :  { %v1869_v4 = vsel %vm1405_vm9, %v1854_v41, 0.0  ;;  %v1871_v52 = vsel %vm1405_vm9, %v1855_v32, 0.0 }
 0x2f8   :  { %2422 = vlog2.f32 %v1494_v47  ;;  %v1870_v9 = vadd.f32 %v1869_v4, %v1868_v57  ;;  %v1895_v49 = vpop.permute.xlu1 %1894 }
 0x2f9   :  { %v1923_v53 = vsel %vm1443_vm10, %v1895_v49, 0.0  ;;  %v1513_v56 = vld [vmem:[#allocation2 + $0x8] sm:$0xff] }
 0x2fa   :  { %v1872_v59 = vadd.f32 %v1871_v52, %v1870_v9  ;;  %v3179_v10 = vadd.f32 %v1923_v53, %v1922_v46  ;;  %1530 = vrot.lane.b32.xlu1 %v1513_v56, %s2457_s23  ;;  %v1515_v27 = vsel %vm1443_vm10, %v1513_v56, 0.0 }
 0x2fc   :  { %v1775_v33 = vpop.permute.xlu1 %1774 }
 0x2fd   :  { %v1796_v38 = vsub.f32 %v2544_v15, %v1775_v33 }
 0x2fe   :  { %1548 = vrot.lane.b32.xlu1 %v1513_v56, %s2456_s22 }
 0x2ff   :  { %v1806_v63 = vand.u32 2147483647, %v1796_v38 }
 0x300   :  { %v1846_v43 = vpop.permute.xlu1 %1845 }
 0x301   :  { %v1856_v7 = vmul.f32 %v1842_v1, %v1806_v63 }
 0x302   :  { %1566 = vrot.lane.b32.xlu1 %v1513_v56, %s2453_s0  ;;  %v1925_v56 = vsel %vm1443_vm10, %v1897_v20, 0.0 }
 0x303   :  { %v1873_v44 = vsel %vm1405_vm9, %v1856_v7, 0.0  ;;  %v1926_v7 = vadd.f32 %v1925_v56, %v3179_v10 }
 0x304   :  { %v1874_v45 = vadd.f32 %v1873_v44, %v1872_v59 }
 0x305   :  { %v2423_v28 = vpop.eup %2422 }
 0x306   :  { %v1497_v11 = vmul.f32 0.6931472, %v2423_v28 }
 0x308   :  { %v1500_v25 = vsub.f32 %v1484_v42, %v1497_v11 }
 0x30a   :  { %v1502_v31 = vmul.f32 %v1500_v25, %v1480_v2 }
 0x30c   :  { %v1504_v30 = vadd.f32 %v1502_v31, %v1482_v58 }
 0x30e   :  { %1507 = vst.msk [vmem:[#allocation2] sm:$0xff] %vm148_vm12, %v1504_v30 }
 0x315   :  { %v1512_v5 = vld [vmem:[#allocation2] sm:$0xff] }
 0x316   :  { %1528 = vrot.lane.b32.xlu0 %v1512_v5, %s2457_s23  ;;  %v1514_v54 = vsel %vm1443_vm10, %v1512_v5, 0.0 }
 0x317   :  { %v1516_v36 = vadd.f32 %v1515_v27, %v1514_v54 }
 0x31a   :  { %1546 = vrot.lane.b32.xlu0 %v1512_v5, %s2456_s22 }
 0x31e   :  { %1564 = vrot.lane.b32.xlu0 %v1512_v5, %s2453_s0 }
 0x326   :  { %1734 = vadd.xlane.f32.xlu1 %v3143_v19 }
 0x337   :  { %1898 = vrot.lane.b32.xlu1 %v2534_v13, %s2458_s24 }
 0x33b   :  { %1900 = vrot.lane.b32.xlu1 %v2539_v14, %s2458_s24 }
 0x33d   :  { %1690 = vadd.xlane.f32.xlu0 %v3141_v23 }
 0x353   :  { %1776 = vrot.lane.b32.xlu0 %v2549_v16, %s2455_s21 }
 0x35f   :  { %1517 = vadd.xlane.f32.xlu1 %v1516_v36 }
 0x36c   :  { %v1531_v48 = vpop.permute.xlu1 %1530 }
 0x36d   :  { %v1535_v55 = vsel %vm1443_vm10, %v1531_v48, 0.0 }
 0x370   :  { %v1549_v12 = vpop.permute.xlu1 %1548 }
 0x371   :  { %v1553_v14 = vsel %vm1443_vm10, %v1549_v12, 0.0 }
 0x374   :  { %v1567_v37 = vpop.permute.xlu1 %1566 }
 0x375   :  { %v1571_v61 = vsel %vm1443_vm10, %v1567_v37, 0.0 }
 0x388   :  { %v1529_v40 = vpop.permute.xlu0 %1528 }
 0x389   :  { %v1534_v19 = vsel %vm1443_vm10, %v1529_v40, 0.0 }
 0x38a   :  { %v1536_v50 = vadd.f32 %v1535_v55, %v1534_v19 }
 0x38c   :  { %1537 = vadd.xlane.f32.xlu0 %v1536_v50  ;;  %v1547_v13 = vpop.permute.xlu0 %1546 }
 0x38d   :  { %v1552_v23 = vsel %vm1443_vm10, %v1547_v13, 0.0 }
 0x38e   :  { %v1554_v34 = vadd.f32 %v1553_v14, %v1552_v23 }
 0x390   :  { %v1565_v35 = vpop.permute.xlu0 %1564  ;;  %1555 = vadd.xlane.f32.xlu1 %v1554_v34 }
 0x391   :  { %v1570_v57 = vsel %vm1443_vm10, %v1565_v35, 0.0 }
 0x392   :  { %v1572_v21 = vadd.f32 %v1571_v61, %v1570_v57 }
 0x394   :  { %1573 = vadd.xlane.f32.xlu0 %v1572_v21 }
 0x3a1   :  { %1904 = vrot.lane.b32.xlu1 %v2549_v16, %s2458_s24 }
 0x3aa   :  { %1902 = vrot.lane.b32.xlu0 %v2544_v15, %s2458_s24 }
 0x3af   :  { %v1735_v8 = vpop.xlane.xlu1 %1734 }
 0x3b0   :  { %v1736_v32 = vrot.slane %v1735_v8, 4 }
 0x3b2   :  { %v1737_v49 = vadd.f32 %v1736_v32, %v1735_v8 }
 0x3b3   :  { %v1899_v3 = vpop.permute.xlu1 %1898 }
 0x3b4   :  { %v1927_v38 = vsel %vm1443_vm10, %v1899_v3, 0.0  ;;  %v1738_v44 = vrot.slane %v1737_v49, 2 }
 0x3b5   :  { %v1928_v58 = vadd.f32 %v1927_v38, %v1926_v7 }
 0x3b6   :  { %v1739_v48 = vadd.f32 %v1738_v44, %v1737_v49 }
 0x3b7   :  { %v1901_v46 = vpop.permute.xlu1 %1900 }
 0x3b8   :  { %v1929_v42 = vsel %vm1443_vm10, %v1901_v46, 0.0  ;;  %v1740_v37 = vrot.slane %v1739_v48, 1 }
 0x3b9   :  { %v1930_v27 = vadd.f32 %v1929_v42, %v1928_v58 }
 0x3ba   :  { %v1741_v61 = vadd.f32 %v1740_v37, %v1739_v48 }
 0x3c6   :  { %v1691_v26 = vpop.xlane.xlu0 %1690 }
 0x3c7   :  { %v1692_v47 = vrot.slane %v1691_v26, 4 }
 0x3c9   :  { %v1693_v52 = vadd.f32 %v1692_v47, %v1691_v26 }
 0x3ca   :  { %v1777_v60 = vpop.permute.xlu0 %1776 }
 0x3cb   :  { %v1797_v62 = vsub.f32 %v2549_v16, %v1777_v60 }
 0x3cd   :  { %v1807_v0 = vand.u32 2147483647, %v1797_v62 }
 0x3cf   :  { %v1857_v24 = vmul.f32 %v1846_v43, %v1807_v0 }
 0x3d1   :  { %v1875_v22 = vsel %vm1405_vm9, %v1857_v24, 0.0 }
 0x3d2   :  { %v1876_v29 = vadd.f32 %v1875_v22, %v1874_v45  ;;  %v1694_v45 = vrot.slane %v1693_v52, 2 }
 0x3d4   :  { %1877 = vadd.xlane.f32.xlu0 %v1876_v29  ;;  %v1695_v43 = vadd.f32 %v1694_v45, %v1693_v52 }
 0x3d6   :  { %v1696_v14 = vrot.slane %v1695_v43, 1 }
 0x3d8   :  { %v1697_v35 = vadd.f32 %v1696_v14, %v1695_v43 }
 0x3e8   :  { %v1518_v17 = vpop.xlane.xlu1 %1517 }
 0x3e9   :  { %v1519_v18 = vrot.slane %v1518_v17, 4 }
 0x3eb   :  { %v1520_v6 = vadd.f32 %v1519_v18, %v1518_v17 }
 0x3ed   :  { %v1521_v51 = vrot.slane %v1520_v6, 2 }
 0x3ef   :  { %v1522_v39 = vadd.f32 %v1521_v51, %v1520_v6 }
 0x3f1   :  { %v1523_v41 = vrot.slane %v1522_v39, 1 }
 0x3f3   :  { %v1524_v15 = vadd.f32 %v1523_v41, %v1522_v39 }
 0x3f5   :  { %2379 = vpush %v1524_v15 }
 0x415   :  { %v1538_v16 = vpop.xlane.xlu0 %1537 }
 0x416   :  { %v1539_v4 = vrot.slane %v1538_v16, 4 }
 0x418   :  { %v1540_v9 = vadd.f32 %v1539_v4, %v1538_v16 }
 0x419   :  { %v1556_v53 = vpop.xlane.xlu1 %1555 }
 0x41a   :  { %v1541_v59 = vrot.slane %v1540_v9, 2  ;;  %v1557_v33 = vrot.slane %v1556_v53, 4 }
 0x41c   :  { %v1558_v63 = vadd.f32 %v1557_v33, %v1556_v53  ;;  %v1542_v1 = vadd.f32 %v1541_v59, %v1540_v9 }
 0x41d   :  { %v1574_v28 = vpop.xlane.xlu0 %1573  ;;  %v1905_v31 = vpop.permute.xlu1 %1904 }
 0x41e   :  { %v1559_v11 = vrot.slane %v1558_v63, 2  ;;  %v1575_v25 = vrot.slane %v1574_v28, 4  ;;  %v1543_v2 = vrot.slane %v1542_v1, 1  ;;  %v1933_v12 = vsel %vm1443_vm10, %v1905_v31, 0.0 }
 0x420   :  { %v1576_v30 = vadd.f32 %v1575_v25, %v1574_v28  ;;  %v1544_v5 = vadd.f32 %v1543_v2, %v1542_v1  ;;  %v1560_v54 = vadd.f32 %v1559_v11, %v1558_v63 }
 0x421   :  { %v1903_v36 = vpop.permute.xlu0 %1902 }
 0x422   :  { %v1577_v20 = vrot.slane %v1576_v30, 2  ;;  %v1931_v10 = vsel %vm1443_vm10, %v1903_v36, 0.0  ;;  %2381 = vpush %v1544_v5  ;;  %v1561_v40 = vrot.slane %v1560_v54, 1 }
 0x423   :  { %v1932_v55 = vadd.f32 %v1931_v10, %v1930_v27 }
 0x424   :  { %v1562_v19 = vadd.f32 %v1561_v40, %v1560_v54  ;;  %v1578_v50 = vadd.f32 %v1577_v20, %v1576_v30 }
 0x425   :  { %v1934_v13 = vadd.f32 %v1933_v12, %v1932_v55 }
 0x426   :  { %s2380_s25 = spop %2379  ;;  %2383 = vpush %v1562_v19  ;;  %v1579_v23 = vrot.slane %v1578_v50, 1 }
 0x427   :  { %s1952_s26 = smul.f32 -0.00625, %s2380_s25  ;;  %1935 = vadd.xlane.f32.xlu1 %v1934_v13 }
 0x428   :  { %v1580_v34 = vadd.f32 %v1579_v23, %v1578_v50 }
 0x429   :  { %1954 = sst [smem:[#allocation5 + $0x1]] %s1952_s26 }
 0x42a   :  { %2385 = vpush %v1580_v34 }
 0x42b   :  { %2387 = vpush %v1697_v35 }
 0x42c   :  { %2389 = vpush %v1741_v61 }
 0x453   :  { %s2382_s27 = spop %2381 }
 0x457   :  { %s2384_s28 = spop %2383 }
 0x458   :  { %s1955_s29 = sadd.f32 %s2384_s28, %s2382_s27 }
 0x45a   :  { %s1956_s30 = smul.f32 -0.00625, %s1955_s29 }
 0x45b   :  { %s2386_s4 = spop %2385 }
 0x45c   :  { %1958 = sst [smem:[#allocation5 + $0x2]] %s1956_s30  ;;  %s1949_s1 = smul.f32 -0.0625, %s2386_s4 }
 0x45d   :  { %s3221_s5 = spop %2387  ;;  %v1878_v57 = vpop.xlane.xlu0 %1877 }
 0x45e   :  { %1951 = sst [smem:[#allocation5]] %s1949_s1  ;;  %s2390_s6 = spop %2389  ;;  %v1879_v21 = vrot.slane %v1878_v57, 4 }
 0x45f   :  { %s1743_s7 = smul.f32 32.0, %s2390_s6 }
 0x460   :  { %v1880_v26 = vadd.f32 %v1879_v21, %v1878_v57 }
 0x461   :  { %v1744_v60 = vstv %s1743_s7 }
 0x462   :  { %2424 = vrcp.f32 %v1744_v60  ;;  %v1881_v62 = vrot.slane %v1880_v26, 2 }
 0x464   :  { %v1882_v0 = vadd.f32 %v1881_v62, %v1880_v26 }
 0x466   :  { %v1883_v24 = vrot.slane %v1882_v0, 1 }
 0x468   :  { %v1884_v29 = vadd.f32 %v1883_v24, %v1882_v0 }
 0x46f   :  { %v2425_v22 = vpop.eup %2424 }
 0x470   :  { %2391 = vpush %v2425_v22 }
 0x471   :  { %2393 = vpush %v1884_v29 }
 0x4a1   :  { %s2392_s8 = spop %2391 }
 0x4a2   :  { %s2394_s9 = spop %2393  ;;  %s1747_s12 = smul.f32 %s2392_s8, %s3221_s5 }
 0x4b0   :  { %v1936_v8 = vpop.xlane.xlu1 %1935 }
 0x4b1   :  { %v1937_v3 = vrot.slane %v1936_v8, 4 }
 0x4b3   :  { %v1938_v46 = vadd.f32 %v1937_v3, %v1936_v8 }
 0x4b5   :  { %v1939_v17 = vrot.slane %v1938_v46, 2 }
 0x4b7   :  { %v1940_v18 = vadd.f32 %v1939_v17, %v1938_v46 }
 0x4b9   :  { %v1941_v6 = vrot.slane %v1940_v18, 1 }
 0x4bb   :  { %v1942_v51 = vadd.f32 %v1941_v6, %v1940_v18 }
 0x4bd   :  { %2395 = vpush %v1942_v51 }
 0x4ee   :  { %s2396_s10 = spop %2395 }
 0x4ef   :  { %s1944_s11 = smul.f32 32.0, %s2396_s10 }
 0x4f1   :  { %v1945_v39 = vstv %s1944_s11 }
 0x4f2   :  { %2426 = vrcp.f32 %v1945_v39 }
 0x4ff   :  { %v2427_v41 = vpop.eup %2426 }
 0x500   :  { %2397 = vpush %v2427_v41 }
 0x531   :  { %s2398_s13 = spop %2397 }
 0x532   :  { %s1948_s14 = smul.f32 %s2398_s13, %s2394_s9 }
 0x534   :  { %s1959_s18 = sadd.f32 %s1948_s14, %s1747_s12 }
 0x536   :  { %s1960_s19 = smul.f32 -0.01, %s1959_s18 }
 0x538   :  { %1962 = sst [smem:[#allocation5 + $0x3]] %s1960_s19 }
 0x539   :  { %2442 = shalt.err (!%p2439_p4)
}
 0x53a   :  { %s2459_s20 = smov [#allocation5]  }
 0x53b   :  { %1972 = dma.smem_to_vmem %s2459_s20, 16, %s1970_s17, [#allocation6]  }
 0x53c   :  { %2447 = dma.done.wait [#allocation6], 16  }
 0x53d   :  { %2448 = vsyncadd [#allocation6], 4294967280 }
 0x53e   :  { %1976 = sfence }
 0x53f   :  { %1977 = vsyncpa [#allocation6], 1 }

</bundles_post_ra>
